<compile_context>
chip_gen: v7x
topology: tpu7x:2x2x1
jax: 0.10.0
libtpu: 0.0.40
codegen_flags: <defaults>
</compile_context>

<pallas_src>
import jax
import jax.numpy as jnp
from jax.experimental import pallas as pl
from jax.experimental.pallas import tpu as pltpu


def _round_up(n, m):
    return ((n + m - 1) // m) * m


def mesosep_kernel(x_ref, w1_ref, b1_ref, w2_ref, b2_ref, w3_ref, b3_ref, z_ref):
    """Fused E/S per-node MLP on `npack`-node-packed rows (everything lane-dense)."""
    x = x_ref[...]                                                          # (TR, npack*F)
    h = jnp.dot(x, w1_ref[...], preferred_element_type=jnp.float32) + b1_ref[...]
    h = jnp.maximum(h, 0.0)                                                 # (TR, npack*2H)
    h = jnp.dot(h, w2_ref[...], preferred_element_type=jnp.float32) + b2_ref[...]
    h = jnp.maximum(h, 0.0)                                                 # (TR, npack*2H)
    z = jnp.dot(h, w3_ref[...], preferred_element_type=jnp.float32) + b3_ref[...]
    z_ref[...] = z.astype(z_ref.dtype)                                      # (TR, npack*2)


def pack_params(params, npack):
    """Fold eval-mode BN into the Linear layers, fuse the E/S subnets into one
    block-diagonal chain, then replicate it `npack` times block-diagonally so that
    `npack` nodes are processed per packed row."""
    w1, b1, s1, t1 = params["w1"], params["b1"], params["s1"], params["t1"]
    w2, b2, s2, t2 = params["w2"], params["b2"], params["s2"], params["t2"]
    w3, b3 = params["w3"], params["b3"]
    H = w1.shape[2]

    # BN fold:  (x@W + b) * s + t  ==  x @ (W*s) + (b*s + t)
    w1f, b1f = w1 * s1, b1 * s1 + t1          # (2, F, H), (2, 1, H)
    w2f, b2f = w2 * s2, b2 * s2 + t2          # (2, H, H), (2, 1, H)

    # Fuse E/S into one per-node chain.
    w1p = jnp.concatenate([w1f[0], w1f[1]], axis=1)                 # (F, 2H)
    b1p = jnp.concatenate([b1f[0], b1f[1]], axis=1)                 # (1, 2H)
    zH = jnp.zeros((H, H), jnp.float32)
    w2p = jnp.block([[w2f[0], zH], [zH, w2f[1]]])                   # (2H, 2H)
    b2p = jnp.concatenate([b2f[0], b2f[1]], axis=1)                 # (1, 2H)
    z1 = jnp.zeros((H, 1), jnp.float32)
    w3p = jnp.block([[w3[0], z1], [z1, w3[1]]])                     # (2H, 2)
    b3p = jnp.concatenate([b3[0], b3[1]], axis=1)                   # (1, 2)

    # Replicate block-diagonally for npack nodes per packed row.
    eye = jnp.eye(npack, dtype=jnp.float32)
    return {
        "w1": jnp.asarray(jnp.kron(eye, w1p), jnp.float32),   # (npack*F,  npack*2H)
        "b1": jnp.tile(b1p, (1, npack)).astype(jnp.float32),  # (1,        npack*2H)
        "w2": jnp.asarray(jnp.kron(eye, w2p), jnp.float32),   # (npack*2H, npack*2H)
        "b2": jnp.tile(b2p, (1, npack)).astype(jnp.float32),  # (1,        npack*2H)
        "w3": jnp.asarray(jnp.kron(eye, w3p), jnp.float32),   # (npack*2H, npack*2)
        "b3": jnp.tile(b3p, (1, npack)).astype(jnp.float32),  # (1,        npack*2)
    }


def mesosep_forward(x, batch, params, num_graphs, tile_nodes=16384):
    """Returns (core_out [G,2], cell_out [N,2]) — the edge_index=None path of MesoSep.forward."""
    N, F = x.shape
    H = params["w1"].shape[2]

    # Pack npack nodes per row so the kernel's lane axis is 128-wide (lane-dense loads,
    # matmuls and stores) WITHOUT a host-side transpose of x.  Fallback npack=1 stays
    # correct (just lane-padded) when F doesn't divide 128 or H is large.
    if 128 % F == 0 and (128 // F) * 2 * H <= 1024:
        npack = 128 // F
    else:
        npack = 1

    packed = pack_params(params, npack)
    in_w = npack * F
    hid_w = packed["w2"].shape[0]
    out_w = npack * 2

    # Tile selection: ~tile_nodes nodes per grid step (amortizes per-step overhead),
    # clamped for small problems so tiny N isn't over-padded.
    R = pl.cdiv(N, npack)
    target_tile_r = max(8, tile_nodes // npack)
    if R <= target_tile_r:
        tile_r = _round_up(R, 8)
        grid = 1
    else:
        tile_r = _round_up(target_tile_r, 8)
        grid = pl.cdiv(R, tile_r)
    R_pad = grid * tile_r
    N_pad = R_pad * npack

    xf = x.astype(jnp.float32)
    if N_pad != N:
        # TODO(synk): ideally the producer supplies x already padded to N_pad so this
        # extra HBM pass disappears entirely.
        xf = jnp.pad(xf, ((0, N_pad - N), (0, 0)))
    x_packed = xf.reshape(R_pad, in_w)        # free: contiguous row-major reshape

    const = lambda i: (0, 0)                  # noqa: E731  (weights resident across steps)
    flops = 2 * R_pad * (in_w * hid_w + hid_w * hid_w + hid_w * out_w)
    bytes_accessed = 4 * (R_pad * in_w + R_pad * out_w
                          + in_w * hid_w + hid_w * hid_w + hid_w * out_w + 3 * hid_w)

    zt = pl.pallas_call(
        mesosep_kernel,
        out_shape=jax.ShapeDtypeStruct((R_pad, out_w), jnp.float32),
        grid=(grid,),
        in_specs=[
            pl.BlockSpec((tile_r, in_w), lambda i: (i, 0)),   # packed x tile
            pl.BlockSpec((in_w, hid_w), const),               # fused W1 (BN folded, replicated)
            pl.BlockSpec((1, hid_w), const),                  # fused b1
            pl.BlockSpec((hid_w, hid_w), const),              # fused block-diag W2
            pl.BlockSpec((1, hid_w), const),                  # fused b2
            pl.BlockSpec((hid_w, out_w), const),              # fused block-diag W3
            pl.BlockSpec((1, out_w), const),                  # fused b3
        ],
        out_specs=pl.BlockSpec((tile_r, out_w), lambda i: (i, 0)),
        compiler_params=pltpu.CompilerParams(
            dimension_semantics=("parallel",),                # no accumulator -> parallel
            vmem_limit_bytes=32 * 1024 * 1024),
        cost_estimate=pl.CostEstimate(flops=int(flops), transcendentals=0,
                                      bytes_accessed=int(bytes_accessed)),
    )(x_packed, packed["w1"], packed["b1"], packed["w2"], packed["b2"],
      packed["w3"], packed["b3"])

    cell = zt.reshape(R_pad * npack, 2)[:N]                    # (N, 2) = [Z_E, Z_S]

    # global_max_pool(cell, batch): O(N) segment max (empty graphs -> -inf, as before).
    core = jax.ops.segment_max(cell, batch, num_segments=num_graphs)
    return core, cell


def init_params(key, dim_features, hidden):
    """Deterministic synthetic params for both subnets (stacked along axis 0: [E, S])."""
    ks = jax.random.split(key, 8)
    F, H = dim_features, hidden
    eps = 1e-5
    # BatchNorm1d defaults (eval mode): gamma=1, beta=0, running_mean=0, running_var=1
    bn_scale = jnp.full((2, 1, H), 1.0 / jnp.sqrt(1.0 + eps), jnp.float32)
    bn_shift = jnp.zeros((2, 1, H), jnp.float32)
    return {
        "w1": 0.2 * jax.random.normal(ks[0], (2, F, H), jnp.float32),
        "b1": 0.1 * jax.random.normal(ks[1], (2, 1, H), jnp.float32),
        "s1": bn_scale, "t1": bn_shift,
        "w2": 0.2 * jax.random.normal(ks[2], (2, H, H), jnp.float32),
        "b2": 0.1 * jax.random.normal(ks[3], (2, 1, H), jnp.float32),
        "s2": bn_scale, "t2": bn_shift,
        "w3": 0.2 * jax.random.normal(ks[4], (2, H, 1), jnp.float32),
        "b3": 0.1 * jax.random.normal(ks[5], (2, 1, 1), jnp.float32),
    }


def mesosep_ref(x, batch, params, num_graphs):
    """Pure-JAX reference mirroring the PyTorch forward (eval-mode BN, un-fused)."""
    zs = []
    for s in range(2):
        h = x @ params["w1"][s] + params["b1"][s][0]
        h = jnp.maximum(h * params["s1"][s][0] + params["t1"][s][0], 0.0)
        h = h @ params["w2"][s] + params["b2"][s][0]
        h = jnp.maximum(h * params["s2"][s][0] + params["t2"][s][0], 0.0)
        z = h @ params["w3"][s] + params["b3"][s][0]
        zs.append(z)
    cell = jnp.concatenate(zs, axis=1)                                    # (N, 2)
    mask = batch[:, None] == jnp.arange(num_graphs)[None, :]              # (N, G)
    core = jnp.max(jnp.where(mask[:, :, None], cell[:, None, :], -jnp.inf), axis=0)
    return core, cell


if __name__ == "__main__":
    # Small shapes: 256 graph nodes, dim_features=8, hidden layers=[16], 2 graphs.
    N, F, H, G = 256, 8, 16, 2
    key = jax.random.PRNGKey(0)
    kx, kp = jax.random.split(key)

    x = jax.random.normal(kx, (N, F), jnp.float32)
    batch = jnp.concatenate([jnp.zeros((N // 2,), jnp.int32),
                             jnp.ones((N - N // 2,), jnp.int32)])
    params = init_params(kp, F, H)

    core_out, cell_out = mesosep_forward(x, batch, params, num_graphs=G)
    jax.block_until_ready((core_out, cell_out))

    core_ref, cell_ref = mesosep_ref(x, batch, params, G)
    assert core_out.shape == (G, 2) and cell_out.shape == (N, 2)
    assert jnp.allclose(core_out, core_ref, atol=1e-5, rtol=1e-4)
    assert jnp.allclose(cell_out, cell_ref, atol=1e-5, rtol=1e-4)

    print("KERNEL_OK")
</pallas_src>

<mosaic_0001>
module attributes {stable_mosaic.version = 11 : i64} {
  func.func @mesosep_kernel(%arg0: i32, %arg1: memref<16x128xf32, #tpu.memory_space<vmem>>, %arg2: memref<128x512xf32, #tpu.memory_space<vmem>>, %arg3: memref<1x512xf32, #tpu.memory_space<vmem>>, %arg4: memref<512x512xf32, #tpu.memory_space<vmem>>, %arg5: memref<1x512xf32, #tpu.memory_space<vmem>>, %arg6: memref<512x32xf32, #tpu.memory_space<vmem>>, %arg7: memref<1x32xf32, #tpu.memory_space<vmem>>, %arg8: memref<16x32xf32, #tpu.memory_space<vmem>>) attributes {dimension_semantics = [#tpu.dimension_semantics<parallel>], iteration_bounds = array<i64: 1>, scalar_prefetch = 0 : i64, scratch_operands = 0 : i64, tpu.core_type = #tpu.core_type<tc>, window_params = [{transform_indices = @transform_0, window_bounds = array<i64: 16, 128>}, {pipeline_mode = #tpu.pipeline_mode<synchronous>, transform_indices = @transform_1, window_bounds = array<i64: 128, 512>}, {pipeline_mode = #tpu.pipeline_mode<synchronous>, transform_indices = @transform_2, window_bounds = array<i64: 1, 512>}, {pipeline_mode = #tpu.pipeline_mode<synchronous>, transform_indices = @transform_3, window_bounds = array<i64: 512, 512>}, {pipeline_mode = #tpu.pipeline_mode<synchronous>, transform_indices = @transform_4, window_bounds = array<i64: 1, 512>}, {pipeline_mode = #tpu.pipeline_mode<synchronous>, transform_indices = @transform_5, window_bounds = array<i64: 512, 32>}, {pipeline_mode = #tpu.pipeline_mode<synchronous>, transform_indices = @transform_6, window_bounds = array<i64: 1, 32>}, {transform_indices = @transform_7, window_bounds = array<i64: 16, 32>}]} {
    %c0 = arith.constant 0 : index
    %c0_0 = arith.constant 0 : index
    %0 = vector.load %arg1[%c0, %c0_0] : memref<16x128xf32, #tpu.memory_space<vmem>>, vector<16x128xf32>
    %c0_1 = arith.constant 0 : index
    %c0_2 = arith.constant 0 : index
    %1 = vector.load %arg2[%c0_1, %c0_2] : memref<128x512xf32, #tpu.memory_space<vmem>>, vector<128x512xf32>
    %cst = arith.constant dense<0.000000e+00> : vector<16x512xf32>
    %2 = tpu.matmul %0, %1, %cst {dimension_numbers = #tpu.dot_dimension_numbers<[1], [0], [0], [1], [0, 0, 1, 1], [], []>} : vector<16x128xf32>, vector<128x512xf32>, vector<16x512xf32> -> vector<16x512xf32>
    %c0_3 = arith.constant 0 : index
    %c0_4 = arith.constant 0 : index
    %3 = vector.load %arg3[%c0_3, %c0_4] : memref<1x512xf32, #tpu.memory_space<vmem>>, vector<1x512xf32>
    %4 = vector.broadcast %3 : vector<1x512xf32> to vector<16x512xf32>
    %5 = arith.addf %2, %4 : vector<16x512xf32>
    %cst_5 = arith.constant 0.000000e+00 : f32
    %6 = vector.broadcast %cst_5 : f32 to vector<16x512xf32>
    %7 = arith.maximumf %5, %6 : vector<16x512xf32>
    %c0_6 = arith.constant 0 : index
    %c0_7 = arith.constant 0 : index
    %8 = vector.load %arg4[%c0_6, %c0_7] : memref<512x512xf32, #tpu.memory_space<vmem>>, vector<512x512xf32>
    %cst_8 = arith.constant dense<0.000000e+00> : vector<16x512xf32>
    %9 = tpu.matmul %7, %8, %cst_8 {dimension_numbers = #tpu.dot_dimension_numbers<[1], [0], [0], [1], [0, 0, 1, 1], [], []>} : vector<16x512xf32>, vector<512x512xf32>, vector<16x512xf32> -> vector<16x512xf32>
    %c0_9 = arith.constant 0 : index
    %c0_10 = arith.constant 0 : index
    %10 = vector.load %arg5[%c0_9, %c0_10] : memref<1x512xf32, #tpu.memory_space<vmem>>, vector<1x512xf32>
    %11 = vector.broadcast %10 : vector<1x512xf32> to vector<16x512xf32>
    %12 = arith.addf %9, %11 : vector<16x512xf32>
    %cst_11 = arith.constant 0.000000e+00 : f32
    %13 = vector.broadcast %cst_11 : f32 to vector<16x512xf32>
    %14 = arith.maximumf %12, %13 : vector<16x512xf32>
    %c0_12 = arith.constant 0 : index
    %c0_13 = arith.constant 0 : index
    %15 = vector.load %arg6[%c0_12, %c0_13] : memref<512x32xf32, #tpu.memory_space<vmem>>, vector<512x32xf32>
    %cst_14 = arith.constant dense<0.000000e+00> : vector<16x32xf32>
    %16 = tpu.matmul %14, %15, %cst_14 {dimension_numbers = #tpu.dot_dimension_numbers<[1], [0], [0], [1], [0, 0, 1, 1], [], []>} : vector<16x512xf32>, vector<512x32xf32>, vector<16x32xf32> -> vector<16x32xf32>
    %c0_15 = arith.constant 0 : index
    %c0_16 = arith.constant 0 : index
    %17 = vector.load %arg7[%c0_15, %c0_16] : memref<1x32xf32, #tpu.memory_space<vmem>>, vector<1x32xf32>
    %18 = vector.broadcast %17 : vector<1x32xf32> to vector<16x32xf32>
    %19 = arith.addf %16, %18 : vector<16x32xf32>
    %c0_17 = arith.constant 0 : index
    %c0_18 = arith.constant 0 : index
    %20 = vector.load %arg8[%c0_17, %c0_18] : memref<16x32xf32, #tpu.memory_space<vmem>>, vector<16x32xf32>
    tpu.vector_store %arg8[%c0_17, %c0_18], %19 {strides = array<i32>} : memref<16x32xf32, #tpu.memory_space<vmem>>, vector<16x32xf32>,
    return
  }
  func.func @transform_0(%arg0: i32) -> (i32, i32) {
    %c0_i32 = arith.constant 0 : i32
    %c0_i32_0 = arith.constant 0 : i32
    return %arg0, %c0_i32 : i32, i32
  }
  func.func @transform_1(%arg0: i32) -> (i32, i32) {
    %c0_i32 = arith.constant 0 : i32
    %c0_i32_0 = arith.constant 0 : i32
    %c0_i32_1 = arith.constant 0 : i32
    return %c0_i32, %c0_i32_0 : i32, i32
  }
  func.func @transform_2(%arg0: i32) -> (i32, i32) {
    %c0_i32 = arith.constant 0 : i32
    %c0_i32_0 = arith.constant 0 : i32
    %c0_i32_1 = arith.constant 0 : i32
    return %c0_i32, %c0_i32_0 : i32, i32
  }
  func.func @transform_3(%arg0: i32) -> (i32, i32) {
    %c0_i32 = arith.constant 0 : i32
    %c0_i32_0 = arith.constant 0 : i32
    %c0_i32_1 = arith.constant 0 : i32
    return %c0_i32, %c0_i32_0 : i32, i32
  }
  func.func @transform_4(%arg0: i32) -> (i32, i32) {
    %c0_i32 = arith.constant 0 : i32
    %c0_i32_0 = arith.constant 0 : i32
    %c0_i32_1 = arith.constant 0 : i32
    return %c0_i32, %c0_i32_0 : i32, i32
  }
  func.func @transform_5(%arg0: i32) -> (i32, i32) {
    %c0_i32 = arith.constant 0 : i32
    %c0_i32_0 = arith.constant 0 : i32
    %c0_i32_1 = arith.constant 0 : i32
    return %c0_i32, %c0_i32_0 : i32, i32
  }
  func.func @transform_6(%arg0: i32) -> (i32, i32) {
    %c0_i32 = arith.constant 0 : i32
    %c0_i32_0 = arith.constant 0 : i32
    %c0_i32_1 = arith.constant 0 : i32
    return %c0_i32, %c0_i32_0 : i32, i32
  }
  func.func @transform_7(%arg0: i32) -> (i32, i32) {
    %c0_i32 = arith.constant 0 : i32
    %c0_i32_0 = arith.constant 0 : i32
    return %arg0, %c0_i32 : i32, i32
  }
}

</mosaic_0001>

<bundles_post_ra>
// kernel: tpu_custom_call.1
= control target key start
LH: loop header
LB: loop body
LE: loop exit
PB: predicated region body
PF: predicated region fallthrough
CT: control target
= control target key end

     0   :  { %12 = vsyncpa [#allocation3], 0  ;;  %s2173_s0 = inlined_call_operand.vmem [shape: f32[16,128], index: 0, kind: input, shape index: {}]   ;;  %s2174_s1 = inlined_call_operand.vmem [shape: f32[128,512], index: 1, kind: input, shape index: {}]   ;;  %s2175_s2 = inlined_call_operand.vmem [shape: f32[1,512], index: 2, kind: input, shape index: {}]   ;;  %s2176_s3 = inlined_call_operand.hbm [shape: f32[512,512], index: 3, kind: input, shape index: {}]   ;;  %s2177_s4 = inlined_call_operand.vmem [shape: f32[1,512], index: 4, kind: input, shape index: {}]   ;;  %s2178_s5 = inlined_call_operand.vmem [shape: f32[512,32], index: 5, kind: input, shape index: {}]   ;;  %s2179_s6 = inlined_call_operand.vmem [shape: f32[1,32], index: 6, kind: input, shape index: {}]   ;;  %s2180_s7 = inlined_call_operand.hbm [shape: f32[16,32], index: 7, kind: output, shape index: {}]  }
   0x1   :  { %13 = vsyncpa [#allocation4], 0  ;;  %s1658_s24 = smov [#allocation2]   ;;  %s1610_s28 = scalar_lea.hbm %s2176_s3, 32768 }
   0x2   :  { %s25_s25 = sshll.u32 %s1658_s24, 4  ;;  %p1611_p0 = scmp.ne.s32.totalorder %s2176_s3, %s1610_s28  ;;  %s26_s25 = int_to_ptr.vmem [resolvable:$true] %s25_s25 }
   0x3   :  { %p1614_p1 = scmp.lt.u32.totalorder %s1610_s28, %s2176_s3 }
   0x5   :  { %p1616_p2 = pnand %p1614_p1, %p1611_p0 }
   0x7   :  { %1619 = shalt.err (!%p1616_p2)
}
   0x8   :  { %s1620_s10 = scalar_lea.vmem %s26_s25, 32768  ;;  %p1625_p4 = scmp.lt.s32.totalorder %s26_s25, %s26_s25 }
   0x9   :  { %p1621_p3 = scmp.ne.s32.totalorder %s26_s25, %s1620_s10  ;;  %p1626_p5 = scmp.lt.s32.totalorder %s1620_s10, %s1620_s10 }
   0xb   :  { %p1627_p6 = por %p1626_p5, %p1625_p4 }
   0xd   :  { %p1628_p7 = pnand %p1627_p6, %p1621_p3 }
   0xf   :  { %1631 = shalt.err (!%p1628_p7)
}
  0x10   :  { %s1659_s11 = smov 512   ;;  %s1660_s12 = smov 32  }
  0x11   :  { %31 = dma.hbm_to_vmem [thread:$0]  %s2176_s3, 32768, %s26_s25, [#allocation3], %s1659_s11, %s1659_s11, %s1660_s12  }
  0x12   :  { %1654 = dma.done.wait [#allocation3], 32768  }
  0x13   :  { %1655 = vsyncadd [#allocation3], 4294934528  ;;  %v1661_v0 = vmov 0.0   ;;  %v44_v1 = vld [vmem:[%s2174_s1 + $0x8] sm:$0xff]  ;;  %v43_v3 = vld [vmem:[%s2174_s1] sm:$0xff]  ;;  %vm1106_vm0 = vcmask 261120  }
  0x14   :  { %193 = vmatprep.mubr.f32.mxu0 %v1661_v0  ;;  %270 = vmatprep.mubr.f32.mxu1 %v1661_v0  ;;  %v48_v2 = vld [vmem:[%s2174_s1 + $0x28] sm:$0xff]  ;;  %v47_v5 = vld [vmem:[%s2174_s1 + $0x20] sm:$0xff]  ;;  %v46_v28 = vld [vmem:[%s2174_s1 + $0x18] sm:$0xff]  ;;  %s1662_s23 = smov [#allocation5]  }
  0x15   :  { %v1203_v4 = vpack.c.bf16 %v48_v2, %v44_v1  ;;  %v52_v6 = vld [vmem:[%s2174_s1 + $0x48] sm:$0xff]  ;;  %v1205_v8 = vpack.c.bf16 %v47_v5, %v43_v3  ;;  %v51_v10 = vld [vmem:[%s2174_s1 + $0x40] sm:$0xff]  ;;  %v50_v29 = vld [vmem:[%s2174_s1 + $0x38] sm:$0xff]  ;;  %s1114_s24 = sshll.u32 %s1662_s23, 4  ;;  %s1115_s24 = int_to_ptr.vmem [resolvable:$true] %s1114_s24 }
  0x16   :  { %v56_v7 = vld [vmem:[%s2174_s1 + $0x68] sm:$0xff]  ;;  %v55_v11 = vld [vmem:[%s2174_s1 + $0x60] sm:$0xff]  ;;  %v45_v30 = vld [vmem:[%s2174_s1 + $0x10] sm:$0xff]  ;;  %v1235_v32 = vpack.c.bf16 %v50_v29, %v46_v28  ;;  %p1637_p9 = scmp.lt.s32.totalorder %s1115_s24, %s1115_s24 }
  0x17   :  { %v1207_v9 = vpack.c.bf16 %v56_v7, %v52_v6  ;;  %v60_v12 = vld [vmem:[%s2174_s1 + $0x88] sm:$0xff]  ;;  %1204 = vmatprep.subr.bf16.mxu0 %v1203_v4  ;;  %v1209_v14 = vpack.c.bf16 %v55_v11, %v51_v10  ;;  %v59_v16 = vld [vmem:[%s2174_s1 + $0x80] sm:$0xff]  ;;  %v49_v33 = vld [vmem:[%s2174_s1 + $0x30] sm:$0xff] }
  0x18   :  { %v64_v13 = vld [vmem:[%s2174_s1 + $0xa8] sm:$0xff]  ;;  %1206 = vmatpush1.bf16.msra.mxu0 %v1205_v8  ;;  %v63_v17 = vld [vmem:[%s2174_s1 + $0xa0] sm:$0xff]  ;;  %v54_v34 = vld [vmem:[%s2174_s1 + $0x58] sm:$0xff]  ;;  %v1237_v37 = vpack.c.bf16 %v49_v33, %v45_v30  ;;  %1236 = vmatprep.subr.bf16.mxu1 %v1235_v32 }
  0x19   :  { %1208 = vmatprep.subr.bf16.mxu0 %v1207_v9  ;;  %v1211_v15 = vpack.c.bf16 %v64_v13, %v60_v12  ;;  %v68_v18 = vld [vmem:[%s2174_s1 + $0xc8] sm:$0xff]  ;;  %v1213_v20 = vpack.c.bf16 %v63_v17, %v59_v16  ;;  %v67_v22 = vld [vmem:[%s2174_s1 + $0xc0] sm:$0xff]  ;;  %v58_v35 = vld [vmem:[%s2174_s1 + $0x78] sm:$0xff] }
  0x1a   :  { %v72_v19 = vld [vmem:[%s2174_s1 + $0xe8] sm:$0xff]  ;;  %v71_v23 = vld [vmem:[%s2174_s1 + $0xe0] sm:$0xff]  ;;  %v1239_v38 = vpack.c.bf16 %v58_v35, %v54_v34  ;;  %v53_v39 = vld [vmem:[%s2174_s1 + $0x50] sm:$0xff]  ;;  %1238 = vmatpush1.bf16.msra.mxu1 %v1237_v37 }
  0x1b   :  { %v1215_v21 = vpack.c.bf16 %v72_v19, %v68_v18  ;;  %v76_v24 = vld [vmem:[%s2174_s1 + $0x108] sm:$0xff]  ;;  %v75_v26 = vld [vmem:[%s2174_s1 + $0x100] sm:$0xff]  ;;  %v1217_v31 = vpack.c.bf16 %v71_v23, %v67_v22  ;;  %v57_v40 = vld [vmem:[%s2174_s1 + $0x70] sm:$0xff] }
  0x1c   :  { %1210 = vmatpush1.bf16.msra.mxu0 %v1209_v14  ;;  %v80_v25 = vld [vmem:[%s2174_s1 + $0x128] sm:$0xff]  ;;  %v79_v27 = vld [vmem:[%s2174_s1 + $0x120] sm:$0xff]  ;;  %v62_v41 = vld [vmem:[%s2174_s1 + $0x98] sm:$0xff]  ;;  %v1241_v45 = vpack.c.bf16 %v57_v40, %v53_v39  ;;  %1240 = vmatprep.subr.bf16.mxu1 %v1239_v38 }
  0x1d   :  { %1212 = vmatprep.subr.bf16.mxu0 %v1211_v15  ;;  %v1219_v36 = vpack.c.bf16 %v80_v25, %v76_v24  ;;  %v84_v42 = vld [vmem:[%s2174_s1 + $0x148] sm:$0xff]  ;;  %v66_v44 = vld [vmem:[%s2174_s1 + $0xb8] sm:$0xff]  ;;  %v1221_v46 = vpack.c.bf16 %v79_v27, %v75_v26  ;;  %v83_v47 = vld [vmem:[%s2174_s1 + $0x140] sm:$0xff] }
  0x1e   :  { %v88_v43 = vld [vmem:[%s2174_s1 + $0x168] sm:$0xff]  ;;  %v1243_v48 = vpack.c.bf16 %v66_v44, %v62_v41  ;;  %v61_v49 = vld [vmem:[%s2174_s1 + $0x90] sm:$0xff]  ;;  %v87_v52 = vld [vmem:[%s2174_s1 + $0x160] sm:$0xff]  ;;  %1242 = vmatpush1.bf16.msra.mxu1 %v1241_v45 }
  0x1f   :  { %v65_v50 = vld [vmem:[%s2174_s1 + $0xb0] sm:$0xff]  ;;  %v1223_v51 = vpack.c.bf16 %v88_v43, %v84_v42  ;;  %v70_v53 = vld [vmem:[%s2174_s1 + $0xd8] sm:$0xff]  ;;  %v92_v55 = vld [vmem:[%s2174_s1 + $0x188] sm:$0xff]  ;;  %v1225_v58 = vpack.c.bf16 %v87_v52, %v83_v47 }
  0x20   :  { %1214 = vmatpush1.bf16.msra.mxu0 %v1213_v20  ;;  %v74_v54 = vld [vmem:[%s2174_s1 + $0xf8] sm:$0xff]  ;;  %v96_v56 = vld [vmem:[%s2174_s1 + $0x1a8] sm:$0xff]  ;;  %v1245_v57 = vpack.c.bf16 %v65_v50, %v61_v49  ;;  %v91_v59 = vld [vmem:[%s2174_s1 + $0x180] sm:$0xff]  ;;  %1244 = vmatprep.subr.bf16.mxu1 %v1243_v48 }
  0x21   :  { %1216 = vmatprep.subr.bf16.mxu0 %v1215_v21  ;;  %v1247_v60 = vpack.c.bf16 %v74_v54, %v70_v53  ;;  %v69_v61 = vld [vmem:[%s2174_s1 + $0xd0] sm:$0xff]  ;;  %v1227_v63 = vpack.c.bf16 %v96_v56, %v92_v55  ;;  %v95_v1 = vld [vmem:[%s2174_s1 + $0x1a0] sm:$0xff]  ;;  %v78_v2 = vld [vmem:[%s2174_s1 + $0x118] sm:$0xff] }
  0x22   :  { %v73_v62 = vld [vmem:[%s2174_s1 + $0xf0] sm:$0xff]  ;;  %v82_v3 = vld [vmem:[%s2174_s1 + $0x138] sm:$0xff]  ;;  %v100_v4 = vld [vmem:[%s2174_s1 + $0x1c8] sm:$0xff]  ;;  %1246 = vmatpush1.bf16.msra.mxu1 %v1245_v57  ;;  %v1229_v7 = vpack.c.bf16 %v95_v1, %v91_v59 }
  0x23   :  { %v104_v5 = vld [vmem:[%s2174_s1 + $0x1e8] sm:$0xff]  ;;  %v1249_v6 = vpack.c.bf16 %v73_v62, %v69_v61  ;;  %v99_v8 = vld [vmem:[%s2174_s1 + $0x1c0] sm:$0xff]  ;;  %1248 = vmatprep.subr.bf16.mxu1 %v1247_v60  ;;  %v1251_v9 = vpack.c.bf16 %v82_v3, %v78_v2  ;;  %v77_v10 = vld [vmem:[%s2174_s1 + $0x110] sm:$0xff] }
  0x24   :  { %1218 = vmatpush1.bf16.msra.mxu0 %v1217_v31  ;;  %v81_v11 = vld [vmem:[%s2174_s1 + $0x130] sm:$0xff]  ;;  %v1231_v12 = vpack.c.bf16 %v104_v5, %v100_v4  ;;  %v103_v13 = vld [vmem:[%s2174_s1 + $0x1e0] sm:$0xff]  ;;  %v86_v14 = vld [vmem:[%s2174_s1 + $0x158] sm:$0xff] }
  0x25   :  { %1220 = vmatprep.subr.bf16.mxu0 %v1219_v36  ;;  %v90_v15 = vld [vmem:[%s2174_s1 + $0x178] sm:$0xff]  ;;  %v292_v16 = vld [vmem:[#allocation2 + $0x8] sm:$0xff]  ;;  %v1253_v18 = vpack.c.bf16 %v81_v11, %v77_v10  ;;  %v1233_v19 = vpack.c.bf16 %v103_v13, %v99_v8  ;;  %v85_v21 = vld [vmem:[%s2174_s1 + $0x150] sm:$0xff] }
  0x26   :  { %v296_v17 = vld [vmem:[#allocation2 + $0x28] sm:$0xff]  ;;  %1250 = vmatpush1.bf16.msra.mxu1 %v1249_v6  ;;  %v1255_v20 = vpack.c.bf16 %v90_v15, %v86_v14  ;;  %v89_v22 = vld [vmem:[%s2174_s1 + $0x170] sm:$0xff]  ;;  %v94_v23 = vld [vmem:[%s2174_s1 + $0x198] sm:$0xff] }
  0x27   :  { %1252 = vmatprep.subr.bf16.mxu1 %v1251_v9  ;;  %v98_v24 = vld [vmem:[%s2174_s1 + $0x1b8] sm:$0xff]  ;;  %v1267_v25 = vpack.c.bf16 %v296_v17, %v292_v16  ;;  %v291_v26 = vld [vmem:[#allocation2] sm:$0xff]  ;;  %v1257_v28 = vpack.c.bf16 %v89_v22, %v85_v21  ;;  %v300_v29 = vld [vmem:[#allocation2 + $0x48] sm:$0xff] }
  0x28   :  { %1222 = vmatpush1.bf16.msra.mxu0 %v1221_v46  ;;  %v295_v27 = vld [vmem:[#allocation2 + $0x20] sm:$0xff]  ;;  %v304_v30 = vld [vmem:[#allocation2 + $0x68] sm:$0xff]  ;;  %v1259_v32 = vpack.c.bf16 %v98_v24, %v94_v23  ;;  %v93_v33 = vld [vmem:[%s2174_s1 + $0x190] sm:$0xff] }
  0x29   :  { %1224 = vmatprep.subr.bf16.mxu0 %v1223_v51  ;;  %v41_v31 = vld [vmem:[%s2173_s0] sm:$0xff]  ;;  %v97_v34 = vld [vmem:[%s2174_s1 + $0x1b0] sm:$0xff]  ;;  %v102_v35 = vld [vmem:[%s2174_s1 + $0x1d8] sm:$0xff]  ;;  %v1269_v37 = vpack.c.bf16 %v295_v27, %v291_v26  ;;  %v1271_v38 = vpack.c.bf16 %v304_v30, %v300_v29 }
  0x2a   :  { %1254 = vmatpush1.bf16.msra.mxu1 %v1253_v18  ;;  %v106_v36 = vld [vmem:[%s2174_s1 + $0x1f8] sm:$0xff]  ;;  %v299_v39 = vld [vmem:[#allocation2 + $0x40] sm:$0xff]  ;;  %v1261_v41 = vpack.c.bf16 %v97_v34, %v93_v33  ;;  %v308_v42 = vld [vmem:[#allocation2 + $0x88] sm:$0xff] }
  0x2b   :  { %1256 = vmatprep.subr.bf16.mxu1 %v1255_v20  ;;  %v303_v40 = vld [vmem:[#allocation2 + $0x60] sm:$0xff]  ;;  %v312_v43 = vld [vmem:[#allocation2 + $0xa8] sm:$0xff]  ;;  %v1263_v45 = vpack.c.bf16 %v106_v36, %v102_v35  ;;  %v101_v46 = vld [vmem:[%s2174_s1 + $0x1d0] sm:$0xff] }
  0x2c   :  { %1226 = vmatpush1.bf16.msra.mxu0 %v1225_v58  ;;  %v42_v44 = vld [vmem:[%s2173_s0 + $0x8] sm:$0xff]  ;;  %v105_v47 = vld [vmem:[%s2174_s1 + $0x1f0] sm:$0xff]  ;;  %v294_v48 = vld [vmem:[#allocation2 + $0x18] sm:$0xff]  ;;  %v1273_v50 = vpack.c.bf16 %v303_v40, %v299_v39  ;;  %v1275_v51 = vpack.c.bf16 %v312_v43, %v308_v42 }
  0x2d   :  { %1228 = vmatprep.subr.bf16.mxu0 %v1227_v63  ;;  %v298_v49 = vld [vmem:[#allocation2 + $0x38] sm:$0xff]  ;;  %v307_v52 = vld [vmem:[#allocation2 + $0x80] sm:$0xff]  ;;  %v1265_v54 = vpack.c.bf16 %v105_v47, %v101_v46  ;;  %v316_v55 = vld [vmem:[#allocation2 + $0xc8] sm:$0xff] }
  0x2e   :  { %1258 = vmatpush1.bf16.msra.mxu1 %v1257_v28  ;;  %v311_v53 = vld [vmem:[#allocation2 + $0xa0] sm:$0xff]  ;;  %v320_v56 = vld [vmem:[#allocation2 + $0xe8] sm:$0xff]  ;;  %v1395_v57 = vpack.c.bf16 %v298_v49, %v294_v48  ;;  %v293_v58 = vld [vmem:[#allocation2 + $0x10] sm:$0xff] }
  0x2f   :  { %1260 = vmatprep.subr.bf16.mxu1 %v1259_v32  ;;  %v297_v59 = vld [vmem:[#allocation2 + $0x30] sm:$0xff]  ;;  %v302_v60 = vld [vmem:[#allocation2 + $0x58] sm:$0xff]  ;;  %v1277_v62 = vpack.c.bf16 %v311_v53, %v307_v52  ;;  %v1279_v63 = vpack.c.bf16 %v320_v56, %v316_v55  ;;  %v315_v1 = vld [vmem:[#allocation2 + $0xc0] sm:$0xff] }
  0x30   :  { %1230 = vmatpush1.bf16.msra.mxu0 %v1229_v7  ;;  %v306_v61 = vld [vmem:[#allocation2 + $0x78] sm:$0xff]  ;;  %v319_v2 = vld [vmem:[#allocation2 + $0xe0] sm:$0xff]  ;;  %v1397_v3 = vpack.c.bf16 %v297_v59, %v293_v58  ;;  %v324_v4 = vld [vmem:[#allocation2 + $0x108] sm:$0xff] }
  0x31   :  { %1232 = vmatprep.subr.bf16.mxu0 %v1231_v12  ;;  %v328_v5 = vld [vmem:[#allocation2 + $0x128] sm:$0xff]  ;;  %v1399_v6 = vpack.c.bf16 %v306_v61, %v302_v60  ;;  %v301_v7 = vld [vmem:[#allocation2 + $0x50] sm:$0xff]  ;;  %v310_v9 = vld [vmem:[#allocation2 + $0x98] sm:$0xff]  ;;  %v1281_v11 = vpack.c.bf16 %v319_v2, %v315_v1 }
  0x32   :  { %1262 = vmatpush1.bf16.msra.mxu1 %v1261_v41  ;;  %v305_v8 = vld [vmem:[#allocation2 + $0x70] sm:$0xff]  ;;  %v314_v10 = vld [vmem:[#allocation2 + $0xb8] sm:$0xff]  ;;  %v1283_v12 = vpack.c.bf16 %v328_v5, %v324_v4  ;;  %v323_v13 = vld [vmem:[#allocation2 + $0x100] sm:$0xff] }
  0x33   :  { %1264 = vmatprep.subr.bf16.mxu1 %v1263_v45  ;;  %v327_v14 = vld [vmem:[#allocation2 + $0x120] sm:$0xff]  ;;  %v1401_v15 = vpack.c.bf16 %v305_v8, %v301_v7  ;;  %v332_v16 = vld [vmem:[#allocation2 + $0x148] sm:$0xff]  ;;  %v1403_v18 = vpack.c.bf16 %v314_v10, %v310_v9  ;;  %v313_v20 = vld [vmem:[#allocation2 + $0xb0] sm:$0xff] }
  0x34   :  { %1234 = vmatpush1.bf16.msra.mxu0 %v1233_v19  ;;  %v336_v17 = vld [vmem:[#allocation2 + $0x168] sm:$0xff]  ;;  %v309_v19 = vld [vmem:[#allocation2 + $0x90] sm:$0xff]  ;;  %v318_v21 = vld [vmem:[#allocation2 + $0xd8] sm:$0xff]  ;;  %v1285_v23 = vpack.c.bf16 %v327_v14, %v323_v13 }
  0x35   :  { %1268 = vmatprep.subr.bf16.mxu0 %v1267_v25  ;;  %v322_v22 = vld [vmem:[#allocation2 + $0xf8] sm:$0xff]  ;;  %v1287_v24 = vpack.c.bf16 %v336_v17, %v332_v16  ;;  %v331_v25 = vld [vmem:[#allocation2 + $0x140] sm:$0xff]  ;;  %v1405_v27 = vpack.c.bf16 %v313_v20, %v309_v19  ;;  %v344_v28 = vld [vmem:[#allocation2 + $0x1a8] sm:$0xff] }
  0x36   :  { %1266 = vmatpush1.bf16.msra.mxu1 %v1265_v54  ;;  %v335_v26 = vld [vmem:[#allocation2 + $0x160] sm:$0xff]  ;;  %v1407_v29 = vpack.c.bf16 %v322_v22, %v318_v21  ;;  %v317_v30 = vld [vmem:[#allocation2 + $0xd0] sm:$0xff]  ;;  %v326_v32 = vld [vmem:[#allocation2 + $0x118] sm:$0xff] }
  0x37   :  { %194 = vmatmul.mubr.f32.vlgmr.msra.gmra.mrb[0].mxu0 %v41_v31  ;;  %1396 = vmatprep.subr.bf16.mxu1 %v1395_v57  ;;  %v330_v33 = vld [vmem:[#allocation2 + $0x138] sm:$0xff]  ;;  %v1289_v34 = vpack.c.bf16 %v335_v26, %v331_v25  ;;  %v339_v36 = vld [vmem:[#allocation2 + $0x180] sm:$0xff]  ;;  %v348_v39 = vld [vmem:[#allocation2 + $0x1c8] sm:$0xff] }
  0x38   :  { %199 = vmatprep.mubr.f32.mxu0 %v1661_v0  ;;  %1270 = vmatpush1.bf16.msra.mxu0 %v1269_v37  ;;  %v343_v37 = vld [vmem:[#allocation2 + $0x1a0] sm:$0xff]  ;;  %v352_v40 = vld [vmem:[#allocation2 + $0x1e8] sm:$0xff]  ;;  %v1411_v41 = vpack.c.bf16 %v330_v33, %v326_v32  ;;  %v325_v42 = vld [vmem:[#allocation2 + $0x110] sm:$0xff] }
  0x39   :  { %1272 = vmatprep.subr.bf16.mxu0 %v1271_v38  ;;  %271 = vmatmul.mubr.f32.vlgmr.msra.gmra.mrb[0].mxu1 %v41_v31  ;;  %v321_v31 = vld [vmem:[#allocation2 + $0xf0] sm:$0xff]  ;;  %v338_v45 = vld [vmem:[#allocation2 + $0x178] sm:$0xff]  ;;  %v1293_v46 = vpack.c.bf16 %v343_v37, %v339_v36  ;;  %v1295_v47 = vpack.c.bf16 %v352_v40, %v348_v39  ;;  %v347_v48 = vld [vmem:[#allocation2 + $0x1c0] sm:$0xff] }
  0x3a   :  { %276 = vmatprep.mubr.f32.mxu1 %v1661_v0  ;;  %1398 = vmatpush1.bf16.msra.mxu1 %v1397_v3  ;;  %v340_v0 = vld [vmem:[#allocation2 + $0x188] sm:$0xff]  ;;  %v1409_v38 = vpack.c.bf16 %v321_v31, %v317_v30  ;;  %v329_v43 = vld [vmem:[#allocation2 + $0x130] sm:$0xff]  ;;  %v351_v49 = vld [vmem:[#allocation2 + $0x1e0] sm:$0xff] }
  0x3b   :  { %200 = vmatmul.mubr.f32.gmra.mrb[2].mxu0 %v42_v44  ;;  %1400 = vmatprep.subr.bf16.mxu1 %v1399_v6  ;;  %v1291_v35 = vpack.c.bf16 %v344_v28, %v340_v0  ;;  %v360_v52 = vld [vmem:[#allocation2 + $0x228] sm:$0xff]  ;;  %v333_v54 = vld [vmem:[#allocation2 + $0x150] sm:$0xff]  ;;  %v342_v56 = vld [vmem:[#allocation2 + $0x198] sm:$0xff]  ;;  %v1297_v58 = vpack.c.bf16 %v351_v49, %v347_v48 }
  0x3c   :  { %1274 = vmatpush1.bf16.msra.mxu0 %v1273_v50  ;;  %v1413_v50 = vpack.c.bf16 %v329_v43, %v325_v42  ;;  %v337_v55 = vld [vmem:[#allocation2 + $0x170] sm:$0xff]  ;;  %v346_v57 = vld [vmem:[#allocation2 + $0x1b8] sm:$0xff]  ;;  %v355_v60 = vld [vmem:[#allocation2 + $0x200] sm:$0xff] }
  0x3d   :  { %1276 = vmatprep.subr.bf16.mxu0 %v1275_v51  ;;  %277 = vmatmul.mubr.f32.gmra.mrb[2].mxu1 %v42_v44  ;;  %v334_v44 = vld [vmem:[#allocation2 + $0x158] sm:$0xff]  ;;  %v356_v51 = vld [vmem:[#allocation2 + $0x208] sm:$0xff]  ;;  %v359_v61 = vld [vmem:[#allocation2 + $0x220] sm:$0xff]  ;;  %v1419_v2 = vpack.c.bf16 %v346_v57, %v342_v56 }
  0x3e   :  { %1402 = vmatpush1.bf16.msra.mxu1 %v1401_v15  ;;  %v1415_v53 = vpack.c.bf16 %v338_v45, %v334_v44  ;;  %v1299_v59 = vpack.c.bf16 %v360_v52, %v356_v51  ;;  %v368_v1 = vld [vmem:[#allocation2 + $0x268] sm:$0xff]  ;;  %v341_v3 = vld [vmem:[#allocation2 + $0x190] sm:$0xff]  ;;  %v350_v5 = vld [vmem:[#allocation2 + $0x1d8] sm:$0xff]  ;;  %v1301_v7 = vpack.c.bf16 %v359_v61, %v355_v60 }
  0x3f   :  { %1404 = vmatprep.subr.bf16.mxu1 %v1403_v18  ;;  %v345_v4 = vld [vmem:[#allocation2 + $0x1b0] sm:$0xff]  ;;  %v354_v6 = vld [vmem:[#allocation2 + $0x1f8] sm:$0xff]  ;;  %v363_v9 = vld [vmem:[#allocation2 + $0x240] sm:$0xff] }
  0x40   :  { %1278 = vmatpush1.bf16.msra.mxu0 %v1277_v62  ;;  %v1417_v62 = vpack.c.bf16 %v337_v55, %v333_v54  ;;  %v367_v10 = vld [vmem:[#allocation2 + $0x260] sm:$0xff]  ;;  %v376_v13 = vld [vmem:[#allocation2 + $0x2a8] sm:$0xff]  ;;  %v1423_v14 = vpack.c.bf16 %v354_v6, %v350_v5  ;;  %v349_v15 = vld [vmem:[#allocation2 + $0x1d0] sm:$0xff] }
  0x41   :  { %1280 = vmatprep.subr.bf16.mxu0 %v1279_v63  ;;  %v364_v63 = vld [vmem:[#allocation2 + $0x248] sm:$0xff]  ;;  %v353_v16 = vld [vmem:[#allocation2 + $0x1f0] sm:$0xff]  ;;  %v358_v17 = vld [vmem:[#allocation2 + $0x218] sm:$0xff]  ;;  %v1305_v19 = vpack.c.bf16 %v367_v10, %v363_v9 }
  0x42   :  { %1406 = vmatpush1.bf16.msra.mxu1 %v1405_v27  ;;  %v1303_v8 = vpack.c.bf16 %v368_v1, %v364_v63  ;;  %v362_v18 = vld [vmem:[#allocation2 + $0x238] sm:$0xff]  ;;  %v371_v21 = vld [vmem:[#allocation2 + $0x280] sm:$0xff]  ;;  %v384_v25 = vld [vmem:[#allocation2 + $0x2e8] sm:$0xff] }
  0x43   :  { %1408 = vmatprep.subr.bf16.mxu1 %v1407_v29  ;;  %v375_v22 = vld [vmem:[#allocation2 + $0x2a0] sm:$0xff]  ;;  %v1427_v26 = vpack.c.bf16 %v362_v18, %v358_v17  ;;  %v357_v27 = vld [vmem:[#allocation2 + $0x210] sm:$0xff]  ;;  %v366_v28 = vld [vmem:[#allocation2 + $0x258] sm:$0xff] }
  0x44   :  { %1282 = vmatpush1.bf16.msra.mxu0 %v1281_v11  ;;  %v1421_v11 = vpack.c.bf16 %v345_v4, %v341_v3  ;;  %v361_v0 = vld [vmem:[#allocation2 + $0x230] sm:$0xff]  ;;  %v370_v29 = vld [vmem:[#allocation2 + $0x278] sm:$0xff]  ;;  %v1309_v30 = vpack.c.bf16 %v375_v22, %v371_v21  ;;  %v379_v32 = vld [vmem:[#allocation2 + $0x2c0] sm:$0xff] }
  0x45   :  { %1284 = vmatprep.subr.bf16.mxu0 %v1283_v12  ;;  %v372_v12 = vld [vmem:[#allocation2 + $0x288] sm:$0xff]  ;;  %v383_v33 = vld [vmem:[#allocation2 + $0x2e0] sm:$0xff]  ;;  %v1431_v37 = vpack.c.bf16 %v370_v29, %v366_v28  ;;  %v369_v39 = vld [vmem:[#allocation2 + $0x270] sm:$0xff] }
  0x46   :  { %1410 = vmatpush1.bf16.msra.mxu1 %v1409_v38  ;;  %v1307_v20 = vpack.c.bf16 %v376_v13, %v372_v12  ;;  %v392_v36 = vld [vmem:[#allocation2 + $0x328] sm:$0xff]  ;;  %v365_v38 = vld [vmem:[#allocation2 + $0x250] sm:$0xff]  ;;  %v374_v40 = vld [vmem:[#allocation2 + $0x298] sm:$0xff]  ;;  %v1313_v42 = vpack.c.bf16 %v383_v33, %v379_v32 }
  0x47   :  { %1412 = vmatprep.subr.bf16.mxu1 %v1411_v41  ;;  %v378_v41 = vld [vmem:[#allocation2 + $0x2b8] sm:$0xff]  ;;  %v387_v44 = vld [vmem:[#allocation2 + $0x300] sm:$0xff]  ;;  %v400_v48 = vld [vmem:[#allocation2 + $0x368] sm:$0xff] }
  0x48   :  { %1286 = vmatpush1.bf16.msra.mxu0 %v1285_v23  ;;  %v1425_v23 = vpack.c.bf16 %v353_v16, %v349_v15  ;;  %v391_v45 = vld [vmem:[#allocation2 + $0x320] sm:$0xff]  ;;  %v1435_v49 = vpack.c.bf16 %v378_v41, %v374_v40  ;;  %v377_v51 = vld [vmem:[#allocation2 + $0x2b0] sm:$0xff]  ;;  %v382_v52 = vld [vmem:[#allocation2 + $0x2d8] sm:$0xff] }
  0x49   :  { %1288 = vmatprep.subr.bf16.mxu0 %v1287_v24  ;;  %v380_v24 = vld [vmem:[#allocation2 + $0x2c8] sm:$0xff]  ;;  %v1317_v54 = vpack.c.bf16 %v391_v45, %v387_v44  ;;  %v395_v56 = vld [vmem:[#allocation2 + $0x340] sm:$0xff]  ;;  %v385_v63 = vld [vmem:[#allocation2 + $0x2f0] sm:$0xff] }
  0x4a   :  { %1414 = vmatpush1.bf16.msra.mxu1 %v1413_v50  ;;  %v1311_v31 = vpack.c.bf16 %v384_v25, %v380_v24  ;;  %v373_v50 = vld [vmem:[#allocation2 + $0x290] sm:$0xff]  ;;  %v399_v57 = vld [vmem:[#allocation2 + $0x360] sm:$0xff]  ;;  %v408_v60 = vld [vmem:[#allocation2 + $0x3a8] sm:$0xff] }
  0x4b   :  { %1416 = vmatprep.subr.bf16.mxu1 %v1415_v53  ;;  %v386_v53 = vld [vmem:[#allocation2 + $0x2f8] sm:$0xff]  ;;  %v1321_v3 = vpack.c.bf16 %v399_v57, %v395_v56  ;;  %v403_v5 = vld [vmem:[#allocation2 + $0x380] sm:$0xff]  ;;  %v389_v9 = vld [vmem:[#allocation2 + $0x310] sm:$0xff] }
  0x4c   :  { %1290 = vmatpush1.bf16.msra.mxu0 %v1289_v34  ;;  %v1429_v34 = vpack.c.bf16 %v361_v0, %v357_v27  ;;  %v1439_v61 = vpack.c.bf16 %v386_v53, %v382_v52  ;;  %v390_v1 = vld [vmem:[#allocation2 + $0x318] sm:$0xff]  ;;  %v407_v6 = vld [vmem:[#allocation2 + $0x3a0] sm:$0xff]  ;;  %v393_v10 = vld [vmem:[#allocation2 + $0x330] sm:$0xff] }
  0x4d   :  { %1292 = vmatprep.subr.bf16.mxu0 %v1291_v35  ;;  %v388_v35 = vld [vmem:[#allocation2 + $0x308] sm:$0xff]  ;;  %v402_v12 = vld [vmem:[#allocation2 + $0x378] sm:$0xff]  ;;  %v1325_v13 = vpack.c.bf16 %v407_v6, %v403_v5  ;;  %v397_v16 = vld [vmem:[#allocation2 + $0x350] sm:$0xff] }
  0x4e   :  { %1418 = vmatpush1.bf16.msra.mxu1 %v1417_v62  ;;  %v1315_v43 = vpack.c.bf16 %v392_v36, %v388_v35  ;;  %v381_v62 = vld [vmem:[#allocation2 + $0x2d0] sm:$0xff]  ;;  %v406_v18 = vld [vmem:[#allocation2 + $0x398] sm:$0xff]  ;;  %v412_v25 = vld [vmem:[#allocation2 + $0x3c8] sm:$0xff] }
  0x4f   :  { %1420 = vmatprep.subr.bf16.mxu1 %v1419_v2  ;;  %v394_v2 = vld [vmem:[#allocation2 + $0x338] sm:$0xff]  ;;  %v401_v17 = vld [vmem:[#allocation2 + $0x370] sm:$0xff]  ;;  %v411_v29 = vld [vmem:[#allocation2 + $0x3c0] sm:$0xff] }
  0x50   :  { %1294 = vmatpush1.bf16.msra.mxu0 %v1293_v46  ;;  %v1433_v46 = vpack.c.bf16 %v369_v39, %v365_v38  ;;  %v405_v22 = vld [vmem:[#allocation2 + $0x390] sm:$0xff]  ;;  %v414_v27 = vld [vmem:[#allocation2 + $0x3d8] sm:$0xff]  ;;  %v420_v36 = vld [vmem:[#allocation2 + $0x408] sm:$0xff] }
  0x51   :  { %1296 = vmatprep.subr.bf16.mxu0 %v1295_v47  ;;  %v396_v47 = vld [vmem:[#allocation2 + $0x348] sm:$0xff]  ;;  %v418_v28 = vld [vmem:[#allocation2 + $0x3f8] sm:$0xff]  ;;  %v413_v33 = vld [vmem:[#allocation2 + $0x3d0] sm:$0xff] }
  0x52   :  { %1422 = vmatpush1.bf16.msra.mxu1 %v1421_v11  ;;  %v1319_v55 = vpack.c.bf16 %v400_v48, %v396_v47  ;;  %v398_v11 = vld [vmem:[#allocation2 + $0x358] sm:$0xff]  ;;  %v1925_v45 = vld [vmem:[%s2175_s2] sm:$0xf]  ;;  %v421_v52 = vld [vmem:[#allocation2 + $0x410] sm:$0xff] }
  0x53   :  { %1424 = vmatprep.subr.bf16.mxu1 %v1423_v14  ;;  %v1445_v14 = vpack.c.bf16 %v393_v10, %v389_v9  ;;  %v1447_v15 = vpack.c.bf16 %v402_v12, %v398_v11  ;;  %v422_v38 = vld [vmem:[#allocation2 + $0x418] sm:$0xff]  ;;  %v428_v56 = vld [vmem:[#allocation2 + $0x448] sm:$0xff] }
  0x54   :  { %1298 = vmatpush1.bf16.msra.mxu0 %v1297_v58  ;;  %v1437_v58 = vpack.c.bf16 %v377_v51, %v373_v50  ;;  %v426_v40 = vld [vmem:[#allocation2 + $0x438] sm:$0xff]  ;;  %v419_v50 = vld [vmem:[#allocation2 + $0x400] sm:$0xff]  ;;  %v432_v57 = vld [vmem:[#allocation2 + $0x468] sm:$0xff] }
  0x55   :  { %1300 = vmatprep.subr.bf16.mxu0 %v1299_v59  ;;  %v404_v59 = vld [vmem:[#allocation2 + $0x388] sm:$0xff]  ;;  %v1459_v41 = vpack.c.bf16 %v426_v40, %v422_v38  ;;  %v423_v51 = vld [vmem:[#allocation2 + $0x420] sm:$0xff]  ;;  %v449_v40 = vld [vmem:[#allocation2 + $0x4f0] sm:$0xff] }
  0x56   :  { %1426 = vmatpush1.bf16.msra.mxu1 %v1425_v23  ;;  %v1323_v4 = vpack.c.bf16 %v408_v60, %v404_v59  ;;  %v409_v23 = vld [vmem:[#allocation2 + $0x3b0] sm:$0xff]  ;;  %v430_v59 = vld [vmem:[#allocation2 + $0x458] sm:$0xff]  ;;  %v436_v9 = vld [vmem:[#allocation2 + $0x488] sm:$0xff] }
  0x57   :  { %1428 = vmatprep.subr.bf16.mxu1 %v1427_v26  ;;  %v1453_v24 = vpack.c.bf16 %v409_v23, %v405_v22  ;;  %v416_v26 = vld [vmem:[#allocation2 + $0x3e8] sm:$0xff]  ;;  %v434_v60 = vld [vmem:[#allocation2 + $0x478] sm:$0xff] }
  0x58   :  { %1302 = vmatpush1.bf16.msra.mxu0 %v1301_v7  ;;  %v1441_v7 = vpack.c.bf16 %v385_v63, %v381_v62  ;;  %v1327_v0 = vpack.c.bf16 %v416_v26, %v412_v25  ;;  %v1333_v62 = vpack.c.bf16 %v423_v51, %v419_v50  ;;  %v1463_v6 = vpack.c.bf16 %v434_v60, %v430_v59  ;;  %v437_v25 = vld [vmem:[#allocation2 + $0x490] sm:$0xff] }
  0x59   :  { %1304 = vmatprep.subr.bf16.mxu0 %v1303_v8  ;;  %v1443_v8 = vpack.c.bf16 %v394_v2, %v390_v1  ;;  %v1335_v1 = vpack.c.bf16 %v432_v57, %v428_v56  ;;  %v427_v2 = vld [vmem:[#allocation2 + $0x440] sm:$0xff]  ;;  %v441_v26 = vld [vmem:[#allocation2 + $0x4b0] sm:$0xff] }
  0x5a   :  { %1430 = vmatpush1.bf16.msra.mxu1 %v1429_v34  ;;  %v417_v34 = vld [vmem:[#allocation2 + $0x3f0] sm:$0xff] }
  0x5b   :  { %1432 = vmatprep.subr.bf16.mxu1 %v1431_v37  ;;  %v1457_v35 = vpack.c.bf16 %v417_v34, %v413_v33  ;;  %v424_v37 = vld [vmem:[#allocation2 + $0x428] sm:$0xff]  ;;  %v1469_v33 = vpack.c.bf16 %v441_v26, %v437_v25  ;;  %v443_v34 = vld [vmem:[#allocation2 + $0x4c0] sm:$0xff]  ;;  %v453_v59 = vld [vmem:[#allocation2 + $0x510] sm:$0xff] }
  0x5c   :  { %1306 = vmatpush1.bf16.msra.mxu0 %v1305_v19  ;;  %v410_v19 = vld [vmem:[#allocation2 + $0x3b8] sm:$0xff]  ;;  %v1331_v39 = vpack.c.bf16 %v424_v37, %v420_v36  ;;  %v457_v60 = vld [vmem:[#allocation2 + $0x530] sm:$0xff] }
  0x5d   :  { %1308 = vmatprep.subr.bf16.mxu0 %v1307_v20  ;;  %v1449_v20 = vpack.c.bf16 %v401_v17, %v397_v16  ;;  %v1451_v21 = vpack.c.bf16 %v410_v19, %v406_v18  ;;  %v478_v25 = vld [vmem:[#allocation2 + $0x5d8] sm:$0xff] }
  0x5e   :  { %1434 = vmatpush1.bf16.msra.mxu1 %v1433_v46  ;;  %v482_v26 = vld [vmem:[#allocation2 + $0x5f8] sm:$0xff] }
  0x5f   :  { %1436 = vmatprep.subr.bf16.mxu1 %v1435_v49 }
  0x60   :  { %1310 = vmatpush1.bf16.msra.mxu0 %v1309_v30  ;;  %v415_v30 = vld [vmem:[#allocation2 + $0x3e0] sm:$0xff] }
  0x61   :  { %1312 = vmatprep.subr.bf16.mxu0 %v1311_v31  ;;  %v1455_v31 = vpack.c.bf16 %v418_v28, %v414_v27  ;;  %v1329_v32 = vpack.c.bf16 %v415_v30, %v411_v29  ;;  %v444_v27 = vld [vmem:[#allocation2 + $0x4c8] sm:$0xff]  ;;  %v446_v29 = vld [vmem:[#allocation2 + $0x4d8] sm:$0xff] }
  0x62   :  { %1438 = vmatpush1.bf16.msra.mxu1 %v1437_v58  ;;  %v448_v28 = vld [vmem:[#allocation2 + $0x4e8] sm:$0xff]  ;;  %v450_v30 = vld [vmem:[#allocation2 + $0x4f8] sm:$0xff] }
  0x63   :  { %1440 = vmatprep.subr.bf16.mxu1 %v1439_v61  ;;  %v1343_v37 = vpack.c.bf16 %v448_v28, %v444_v27  ;;  %v1471_v38 = vpack.c.bf16 %v450_v30, %v446_v29  ;;  %v475_v29 = vld [vmem:[#allocation2 + $0x5c0] sm:$0xff] }
  0x64   :  { %1314 = vmatpush1.bf16.msra.mxu0 %v1313_v42  ;;  %v109_v42 = vlaneseq  ;;  %v479_v30 = vld [vmem:[#allocation2 + $0x5e0] sm:$0xff] }
  0x65   :  { %1316 = vmatprep.subr.bf16.mxu0 %v1315_v43 }
  0x66   :  { %1442 = vmatpush1.bf16.msra.mxu1 %v1441_v7  ;;  %v1919_v43 = vshrl.u32 %v109_v42, 7  ;;  %v429_v7 = vld [vmem:[#allocation2 + $0x450] sm:$0xff] }
  0x67   :  { %1444 = vmatprep.subr.bf16.mxu1 %v1443_v8  ;;  %v433_v8 = vld [vmem:[#allocation2 + $0x470] sm:$0xff] }
  0x68   :  { %1318 = vmatpush1.bf16.msra.mxu0 %v1317_v54  ;;  %v111_v44 = vsub.s32 0, %v1919_v43  ;;  %v115_v46 = vsub.s32 1, %v1919_v43  ;;  %v123_v12 = vsub.s32 3, %v1919_v43  ;;  %v1465_v19 = vpack.c.bf16 %v433_v8, %v429_v7  ;;  %v461_v8 = vld [vmem:[#allocation2 + $0x550] sm:$0xff] }
  0x69   :  { %1320 = vmatprep.subr.bf16.mxu0 %v1319_v55  ;;  %v425_v55 = vld [vmem:[#allocation2 + $0x430] sm:$0xff] }
  0x6a   :  { %1446 = vmatpush1.bf16.msra.mxu1 %v1445_v14  ;;  %v112_v47 = vrot.slane %v1925_v45, %v111_v44  ;;  %v116_v48 = vrot.slane %v1925_v45, %v115_v46  ;;  %v1461_v63 = vpack.c.bf16 %v425_v55, %v421_v52  ;;  %v438_v14 = vld [vmem:[#allocation2 + $0x498] sm:$0xff]  ;;  %v455_v55 = vld [vmem:[#allocation2 + $0x520] sm:$0xff] }
  0x6b   :  { %1448 = vmatprep.subr.bf16.mxu1 %v1447_v15  ;;  %v442_v15 = vld [vmem:[#allocation2 + $0x4b8] sm:$0xff] }
  0x6c   :  { %1322 = vmatpush1.bf16.msra.mxu0 %v1321_v3  ;;  %v431_v3 = vld [vmem:[#allocation2 + $0x460] sm:$0xff] }
  0x6d   :  { %1324 = vmatprep.subr.bf16.mxu0 %v1323_v4  ;;  %v1337_v18 = vpack.c.bf16 %v431_v3, %v427_v2  ;;  %v1477_v3 = vpack.c.bf16 %v457_v60, %v453_v59  ;;  %v491_v60 = vld [vmem:[#allocation2 + $0x640] sm:$0xff] }
  0x6e   :  { %1450 = vmatpush1.bf16.msra.mxu1 %v1449_v20  ;;  %v435_v20 = vld [vmem:[#allocation2 + $0x480] sm:$0xff] }
  0x6f   :  { %1452 = vmatprep.subr.bf16.mxu1 %v1451_v21  ;;  %v439_v21 = vld [vmem:[#allocation2 + $0x4a0] sm:$0xff] }
  0x70   :  { %1326 = vmatpush1.bf16.msra.mxu0 %v1325_v13  ;;  %v440_v13 = vld [vmem:[#allocation2 + $0x4a8] sm:$0xff] }
  0x71   :  { %1328 = vmatprep.subr.bf16.mxu0 %v1327_v0  ;;  %v1339_v23 = vpack.c.bf16 %v440_v13, %v436_v9  ;;  %v1938_v0 = vrot.slane %v1925_v45, %v123_v12  ;;  %v465_v9 = vld [vmem:[#allocation2 + $0x570] sm:$0xff]  ;;  %v470_v13 = vld [vmem:[#allocation2 + $0x598] sm:$0xff] }
  0x72   :  { %1454 = vmatpush1.bf16.msra.mxu1 %v1453_v24  ;;  %v1467_v24 = vpack.c.bf16 %v442_v15, %v438_v14  ;;  %v474_v14 = vld [vmem:[#allocation2 + $0x5b8] sm:$0xff] }
  0x73   :  { %1456 = vmatprep.subr.bf16.mxu1 %v1455_v31 }
  0x74   :  { %1330 = vmatpush1.bf16.msra.mxu0 %v1329_v32  ;;  %v1341_v32 = vpack.c.bf16 %v439_v21, %v435_v20  ;;  %v1483_v20 = vpack.c.bf16 %v474_v14, %v470_v13  ;;  %v469_v21 = vld [vmem:[#allocation2 + $0x590] sm:$0xff] }
  0x75   :  { %1332 = vmatprep.subr.bf16.mxu0 %v1331_v39  ;;  %v445_v39 = vld [vmem:[#allocation2 + $0x4d0] sm:$0xff] }
  0x76   :  { %1458 = vmatpush1.bf16.msra.mxu1 %v1457_v35  ;;  %v447_v35 = vld [vmem:[#allocation2 + $0x4e0] sm:$0xff]  ;;  %v501_v14 = vld [vmem:[#allocation2 + $0x690] sm:$0xff] }
  0x77   :  { %1460 = vmatprep.subr.bf16.mxu1 %v1459_v41  ;;  %v452_v41 = vld [vmem:[#allocation2 + $0x508] sm:$0xff]  ;;  %v1345_v52 = vpack.c.bf16 %v447_v35, %v443_v34  ;;  %v477_v34 = vld [vmem:[#allocation2 + $0x5d0] sm:$0xff] }
  0x78   :  { %v481_v35 = vld [vmem:[#allocation2 + $0x5f0] sm:$0xff] }
 0x10a   :  { %v195_v49 = vpop.f32.mrb[0].mxu0 }
 0x10b   :  { %v196_v53 = vadd.f32 %v195_v49, %v112_v47  ;;  %v197_v54 = vpop.f32.mrb[1].mxu0  ;;  %v458_v49 = vld [vmem:[#allocation2 + $0x538] sm:$0xff] }
 0x10c   :  { %v198_v58 = vadd.f32 %v197_v54, %v116_v48  ;;  %v1940_v31 = vpop.f32.mrb[0].mxu1  ;;  %v451_v54 = vld [vmem:[#allocation2 + $0x500] sm:$0xff] }
 0x10d   :  { %v283_v5 = vmax.f32 %v196_v53, 0.0  ;;  %v274_v36 = vpop.f32.mrb[1].mxu1  ;;  %v1473_v53 = vpack.c.bf16 %v449_v40, %v445_v39  ;;  %v1349_v2 = vpack.c.bf16 %v455_v55, %v451_v54  ;;  %v490_v39 = vld [vmem:[#allocation2 + $0x638] sm:$0xff]  ;;  %v1361_v40 = vpack.c.bf16 %v479_v30, %v475_v29  ;;  %v496_v54 = vld [vmem:[#allocation2 + $0x668] sm:$0xff] }
 0x10e   :  { %v284_v61 = vmax.f32 %v198_v58, 0.0  ;;  %v201_v4 = vpop.f32.mrb[2].mxu0  ;;  %v275_v42 = vadd.f32 %v274_v36, %v1938_v0  ;;  %v484_v36 = vld [vmem:[#allocation2 + $0x608] sm:$0xff]  ;;  %v494_v55 = vld [vmem:[#allocation2 + $0x658] sm:$0xff] }
 0x10f   :  { %v202_v10 = vadd.f32 %v201_v4, %v112_v47  ;;  %v203_v11 = vpop.f32.mrb[3].mxu0  ;;  %v456_v47 = vld [vmem:[#allocation2 + $0x528] sm:$0xff]  ;;  %v459_v4 = vld [vmem:[#allocation2 + $0x540] sm:$0xff]  ;;  %v518_v30 = vld [vmem:[#allocation2 + $0x718] sm:$0xff] }
 0x110   :  { %633 = vmatprep.mubr.f32.mxu0 %v284_v61  ;;  %787 = vmatprep.mubr.f32.mxu1 %v284_v61  ;;  %v204_v16 = vadd.f32 %v203_v11, %v116_v48  ;;  %v454_v48 = vld [vmem:[#allocation2 + $0x518] sm:$0xff]  ;;  %v286_v50 = vmax.f32 %v275_v42, 0.0  ;;  %v1943_v51 = vpop.f32.mrb[2].mxu1  ;;  %v1347_v57 = vpack.c.bf16 %v456_v47, %v452_v41  ;;  %v460_v61 = vld [vmem:[#allocation2 + $0x548] sm:$0xff]  ;;  %v1489_v41 = vpack.c.bf16 %v481_v35, %v477_v34  ;;  %v483_v42 = vld [vmem:[#allocation2 + $0x600] sm:$0xff] }
 0x111   :  { %634 = vmatmul.mubr.f32.vlgmr.msra.gmra.mrb[4].mxu0 %v283_v5  ;;  %788 = vmatmul.mubr.f32.vlgmr.msra.gmra.mrb[4].mxu1 %v283_v5  ;;  %v287_v17 = vmax.f32 %v202_v10, 0.0  ;;  %v1945_v56 = vpop.f32.mrb[3].mxu1  ;;  %v1475_v58 = vpack.c.bf16 %v458_v49, %v454_v48  ;;  %v463_v5 = vld [vmem:[#allocation2 + $0x560] sm:$0xff]  ;;  %v468_v10 = vld [vmem:[#allocation2 + $0x588] sm:$0xff] }
 0x112   :  { %1334 = vmatpush1.bf16.msra.mxu0 %v1333_v62  ;;  %1462 = vmatpush1.bf16.msra.mxu1 %v1461_v63  ;;  %v288_v22 = vmax.f32 %v204_v16, 0.0  ;;  %v464_v62 = vld [vmem:[#allocation2 + $0x568] sm:$0xff]  ;;  %v462_v63 = vld [vmem:[#allocation2 + $0x558] sm:$0xff]  ;;  %v1353_v15 = vpack.c.bf16 %v463_v5, %v459_v4  ;;  %v1481_v16 = vpack.c.bf16 %v465_v9, %v461_v8  ;;  %v487_v47 = vld [vmem:[#allocation2 + $0x620] sm:$0xff] }
 0x113   :  { %1336 = vmatprep.subr.bf16.mxu0 %v1335_v1  ;;  %1464 = vmatprep.subr.bf16.mxu1 %v1463_v6  ;;  %v466_v1 = vld [vmem:[#allocation2 + $0x578] sm:$0xff]  ;;  %v1351_v6 = vpack.c.bf16 %v464_v62, %v460_v61  ;;  %v472_v11 = vld [vmem:[#allocation2 + $0x5a8] sm:$0xff]  ;;  %v495_v61 = vld [vmem:[#allocation2 + $0x660] sm:$0xff] }
 0x114   :  { %639 = vmatprep.mubr.f32.mxu0 %v288_v22  ;;  %793 = vmatprep.mubr.f32.mxu1 %v288_v22  ;;  %v1479_v7 = vpack.c.bf16 %v466_v1, %v462_v63  ;;  %v473_v22 = vld [vmem:[#allocation2 + $0x5b0] sm:$0xff]  ;;  %v504_v4 = vld [vmem:[#allocation2 + $0x6a8] sm:$0xff]  ;;  %v502_v5 = vld [vmem:[#allocation2 + $0x698] sm:$0xff] }
 0x115   :  { %640 = vmatmul.mubr.f32.gmra.mrb[6].mxu0 %v287_v17  ;;  %794 = vmatmul.mubr.f32.gmra.mrb[6].mxu1 %v287_v17  ;;  %v467_v17 = vld [vmem:[#allocation2 + $0x580] sm:$0xff]  ;;  %v1485_v28 = vpack.c.bf16 %v473_v22, %v469_v21  ;;  %v493_v1 = vld [vmem:[#allocation2 + $0x650] sm:$0xff]  ;;  %v520_v29 = vld [vmem:[#allocation2 + $0x728] sm:$0xff] }
 0x116   :  { %1338 = vmatpush1.bf16.msra.mxu0 %v1337_v18  ;;  %1466 = vmatpush1.bf16.msra.mxu1 %v1465_v19  ;;  %v471_v18 = vld [vmem:[#allocation2 + $0x5a0] sm:$0xff]  ;;  %v1355_v19 = vpack.c.bf16 %v472_v11, %v468_v10 }
 0x117   :  { %1340 = vmatprep.subr.bf16.mxu0 %v1339_v23  ;;  %1468 = vmatprep.subr.bf16.mxu1 %v1467_v24  ;;  %v476_v23 = vld [vmem:[#allocation2 + $0x5c8] sm:$0xff]  ;;  %v1357_v27 = vpack.c.bf16 %v471_v18, %v467_v17  ;;  %v499_v9 = vld [vmem:[#allocation2 + $0x680] sm:$0xff]  ;;  %v510_v18 = vld [vmem:[#allocation2 + $0x6d8] sm:$0xff] }
 0x118   :  { %710 = vmatprep.mubr.f32.mxu0 %v286_v50  ;;  %864 = vmatprep.mubr.f32.mxu1 %v286_v50  ;;  %v480_v24 = vld [vmem:[#allocation2 + $0x5e8] sm:$0xff]  ;;  %v485_v50 = vld [vmem:[#allocation2 + $0x610] sm:$0xff]  ;;  %v503_v10 = vld [vmem:[#allocation2 + $0x6a0] sm:$0xff] }
 0x119   :  { %v512_v17 = vld [vmem:[#allocation2 + $0x6e8] sm:$0xff]  ;;  %v507_v22 = vld [vmem:[#allocation2 + $0x6c0] sm:$0xff] }
 0x11a   :  { %1342 = vmatpush1.bf16.msra.mxu0 %v1341_v32  ;;  %1470 = vmatpush1.bf16.msra.mxu1 %v1469_v33  ;;  %v1359_v32 = vpack.c.bf16 %v480_v24, %v476_v23  ;;  %v1487_v33 = vpack.c.bf16 %v482_v26, %v478_v25  ;;  %v511_v23 = vld [vmem:[#allocation2 + $0x6e0] sm:$0xff]  ;;  %v509_v26 = vld [vmem:[#allocation2 + $0x6d0] sm:$0xff] }
 0x11b   :  { %1344 = vmatprep.subr.bf16.mxu0 %v1343_v37  ;;  %1472 = vmatprep.subr.bf16.mxu1 %v1471_v38  ;;  %v488_v37 = vld [vmem:[#allocation2 + $0x628] sm:$0xff]  ;;  %v486_v38 = vld [vmem:[#allocation2 + $0x618] sm:$0xff]  ;;  %v515_v35 = vld [vmem:[#allocation2 + $0x700] sm:$0xff] }
 0x11c   :  { %v1363_v48 = vpack.c.bf16 %v488_v37, %v484_v36  ;;  %v1491_v49 = vpack.c.bf16 %v490_v39, %v486_v38  ;;  %v519_v36 = vld [vmem:[#allocation2 + $0x720] sm:$0xff]  ;;  %v517_v39 = vld [vmem:[#allocation2 + $0x710] sm:$0xff] }
 0x11e   :  { %1346 = vmatpush1.bf16.msra.mxu0 %v1345_v52  ;;  %1474 = vmatpush1.bf16.msra.mxu1 %v1473_v53  ;;  %v489_v52 = vld [vmem:[#allocation2 + $0x630] sm:$0xff]  ;;  %v492_v53 = vld [vmem:[#allocation2 + $0x648] sm:$0xff] }
 0x11f   :  { %1348 = vmatprep.subr.bf16.mxu0 %v1347_v57  ;;  %1476 = vmatprep.subr.bf16.mxu1 %v1475_v58  ;;  %v498_v57 = vld [vmem:[#allocation2 + $0x678] sm:$0xff]  ;;  %v1365_v58 = vpack.c.bf16 %v487_v47, %v483_v42  ;;  %v1493_v59 = vpack.c.bf16 %v489_v52, %v485_v50  ;;  %v1367_v62 = vpack.c.bf16 %v496_v54, %v492_v53  ;;  %v528_v42 = vld [vmem:[#allocation2 + $0x768] sm:$0xff]  ;;  %v523_v52 = vld [vmem:[#allocation2 + $0x740] sm:$0xff] }
 0x120   :  { %v1495_v63 = vpack.c.bf16 %v498_v57, %v494_v55  ;;  %v526_v47 = vld [vmem:[#allocation2 + $0x758] sm:$0xff]  ;;  %v527_v53 = vld [vmem:[#allocation2 + $0x760] sm:$0xff]  ;;  %v525_v57 = vld [vmem:[#allocation2 + $0x750] sm:$0xff] }
 0x122   :  { %1350 = vmatpush1.bf16.msra.mxu0 %v1349_v2  ;;  %1478 = vmatpush1.bf16.msra.mxu1 %v1477_v3  ;;  %v497_v2 = vld [vmem:[#allocation2 + $0x670] sm:$0xff]  ;;  %v500_v3 = vld [vmem:[#allocation2 + $0x688] sm:$0xff] }
 0x123   :  { %1352 = vmatprep.subr.bf16.mxu0 %v1351_v6  ;;  %1480 = vmatprep.subr.bf16.mxu1 %v1479_v7  ;;  %v506_v6 = vld [vmem:[#allocation2 + $0x6b8] sm:$0xff]  ;;  %v1369_v7 = vpack.c.bf16 %v495_v61, %v491_v60  ;;  %v1497_v8 = vpack.c.bf16 %v497_v2, %v493_v1  ;;  %v1371_v11 = vpack.c.bf16 %v504_v4, %v500_v3  ;;  %v536_v60 = vld [vmem:[#allocation2 + $0x7a8] sm:$0xff]  ;;  %v531_v2 = vld [vmem:[#allocation2 + $0x780] sm:$0xff]  ;;  %v119_v4 = vsub.s32 2, %v1919_v43 }
 0x124   :  { %v1499_v13 = vpack.c.bf16 %v506_v6, %v502_v5  ;;  %v534_v61 = vld [vmem:[#allocation2 + $0x798] sm:$0xff]  ;;  %v535_v3 = vld [vmem:[#allocation2 + $0x7a0] sm:$0xff] }
 0x126   :  { %1354 = vmatpush1.bf16.msra.mxu0 %v1353_v15  ;;  %1482 = vmatpush1.bf16.msra.mxu1 %v1481_v16  ;;  %v505_v15 = vld [vmem:[#allocation2 + $0x6b0] sm:$0xff]  ;;  %v508_v16 = vld [vmem:[#allocation2 + $0x6c8] sm:$0xff] }
 0x127   :  { %1356 = vmatprep.subr.bf16.mxu0 %v1355_v19  ;;  %1484 = vmatprep.subr.bf16.mxu1 %v1483_v20  ;;  %v514_v19 = vld [vmem:[#allocation2 + $0x6f8] sm:$0xff]  ;;  %v1373_v20 = vpack.c.bf16 %v503_v10, %v499_v9  ;;  %v1501_v21 = vpack.c.bf16 %v505_v15, %v501_v14  ;;  %v1375_v24 = vpack.c.bf16 %v512_v17, %v508_v16  ;;  %v540_v9 = vld [vmem:[#allocation2 + $0x7c8] sm:$0xff]  ;;  %v539_v16 = vld [vmem:[#allocation2 + $0x7c0] sm:$0xff] }
 0x128   :  { %v1503_v25 = vpack.c.bf16 %v514_v19, %v510_v18  ;;  %v544_v10 = vld [vmem:[#allocation2 + $0x7e8] sm:$0xff]  ;;  %v1389_v14 = vpack.c.bf16 %v535_v3, %v531_v2  ;;  %v543_v17 = vld [vmem:[#allocation2 + $0x7e0] sm:$0xff]  ;;  %v120_v18 = vrot.slane %v1925_v45, %v119_v4 }
 0x129   :  { %v1391_v19 = vpack.c.bf16 %v544_v10, %v540_v9  ;;  %v934_v45 = vld [vmem:[%s2178_s5 + $0x188] sm:$0xff]  ;;  %v921_v2 = vld [vmem:[%s2178_s5 + $0x120] sm:$0xff] }
 0x12a   :  { %1358 = vmatpush1.bf16.msra.mxu0 %v1357_v27  ;;  %1486 = vmatpush1.bf16.msra.mxu1 %v1485_v28  ;;  %v513_v27 = vld [vmem:[#allocation2 + $0x6f0] sm:$0xff]  ;;  %v516_v28 = vld [vmem:[#allocation2 + $0x708] sm:$0xff] }
 0x12b   :  { %1360 = vmatprep.subr.bf16.mxu0 %v1359_v32  ;;  %1488 = vmatprep.subr.bf16.mxu1 %v1487_v33  ;;  %v522_v32 = vld [vmem:[#allocation2 + $0x738] sm:$0xff]  ;;  %v1377_v33 = vpack.c.bf16 %v511_v23, %v507_v22  ;;  %v1505_v34 = vpack.c.bf16 %v513_v27, %v509_v26  ;;  %v1379_v37 = vpack.c.bf16 %v520_v29, %v516_v28  ;;  %v545_v22 = vld [vmem:[#allocation2 + $0x7f0] sm:$0xff]  ;;  %v901_v23 = vld [vmem:[%s2178_s5 + $0x80] sm:$0xff] }
 0x12c   :  { %v1507_v38 = vpack.c.bf16 %v522_v32, %v518_v30  ;;  %v281_v26 = vadd.f32 %v1945_v56, %v1938_v0  ;;  %v1393_v27 = vpack.c.bf16 %v543_v17, %v539_v16  ;;  %v273_v29 = vadd.f32 %v1940_v31, %v120_v18  ;;  %v917_v0 = vld [vmem:[%s2178_s5 + $0x100] sm:$0xff]  ;;  %v918_v31 = vld [vmem:[%s2178_s5 + $0x108] sm:$0xff]  ;;  %v903_v56 = vld [vmem:[%s2178_s5 + $0x90] sm:$0xff] }
 0x12d   :  { %v922_v3 = vld [vmem:[%s2178_s5 + $0x128] sm:$0xff]  ;;  %v923_v16 = vld [vmem:[%s2178_s5 + $0x130] sm:$0xff]  ;;  %v924_v17 = vld [vmem:[%s2178_s5 + $0x138] sm:$0xff] }
 0x12e   :  { %1362 = vmatpush1.bf16.msra.mxu0 %v1361_v40  ;;  %1490 = vmatpush1.bf16.msra.mxu1 %v1489_v41  ;;  %v521_v40 = vld [vmem:[#allocation2 + $0x730] sm:$0xff]  ;;  %v524_v41 = vld [vmem:[#allocation2 + $0x748] sm:$0xff]  ;;  %v1565_v10 = vpack.c.bf16 %v922_v3, %v921_v2 }
 0x12f   :  { %1364 = vmatprep.subr.bf16.mxu0 %v1363_v48  ;;  %1492 = vmatprep.subr.bf16.mxu1 %v1491_v49  ;;  %v530_v48 = vld [vmem:[#allocation2 + $0x778] sm:$0xff]  ;;  %v1381_v49 = vpack.c.bf16 %v519_v36, %v515_v35  ;;  %v1509_v50 = vpack.c.bf16 %v521_v40, %v517_v39  ;;  %v1383_v54 = vpack.c.bf16 %v528_v42, %v524_v41  ;;  %v935_v36 = vld [vmem:[%s2178_s5 + $0x190] sm:$0xff]  ;;  %v285_v39 = vmax.f32 %v273_v29, 0.0 }
 0x130   :  { %v1511_v55 = vpack.c.bf16 %v530_v48, %v526_v47  ;;  %v904_v35 = vld [vmem:[%s2178_s5 + $0x98] sm:$0xff]  ;;  %v279_v40 = vadd.f32 %v1943_v51, %v120_v18  ;;  %v1557_v42 = vpack.c.bf16 %v918_v31, %v917_v0  ;;  %v887_v47 = vld [vmem:[%s2178_s5 + $0x10] sm:$0xff]  ;;  %v909_v18 = vld [vmem:[%s2178_s5 + $0xc0] sm:$0xff] }
 0x131   :  { %v888_v48 = vld [vmem:[%s2178_s5 + $0x18] sm:$0xff]  ;;  %v911_v29 = vld [vmem:[%s2178_s5 + $0xd0] sm:$0xff] }
 0x132   :  { %1366 = vmatpush1.bf16.msra.mxu0 %v1365_v58  ;;  %1494 = vmatpush1.bf16.msra.mxu1 %v1493_v59  ;;  %v529_v58 = vld [vmem:[#allocation2 + $0x770] sm:$0xff]  ;;  %v532_v59 = vld [vmem:[#allocation2 + $0x788] sm:$0xff]  ;;  %v920_v51 = vld [vmem:[%s2178_s5 + $0x118] sm:$0xff] }
 0x133   :  { %1368 = vmatprep.subr.bf16.mxu0 %v1367_v62  ;;  %1496 = vmatprep.subr.bf16.mxu1 %v1495_v63  ;;  %v538_v62 = vld [vmem:[#allocation2 + $0x7b8] sm:$0xff]  ;;  %v1385_v63 = vpack.c.bf16 %v527_v53, %v523_v52  ;;  %v1513_v1 = vpack.c.bf16 %v529_v58, %v525_v57  ;;  %v1387_v5 = vpack.c.bf16 %v536_v60, %v532_v59  ;;  %v919_v52 = vld [vmem:[%s2178_s5 + $0x110] sm:$0xff]  ;;  %v905_v53 = vld [vmem:[%s2178_s5 + $0xa0] sm:$0xff]  ;;  %v289_v58 = vmax.f32 %v279_v40, 0.0 }
 0x134   :  { %v1515_v6 = vpack.c.bf16 %v538_v62, %v534_v61  ;;  %v938_v57 = vld [vmem:[%s2178_s5 + $0x1a8] sm:$0xff]  ;;  %v1529_v59 = vpack.c.bf16 %v888_v48, %v887_v47  ;;  %v1561_v60 = vpack.c.bf16 %v920_v51, %v919_v52  ;;  %v889_v61 = vld [vmem:[%s2178_s5 + $0x20] sm:$0xff]  ;;  %v895_v31 = vld [vmem:[%s2178_s5 + $0x50] sm:$0xff] }
 0x135   :  { %v890_v62 = vld [vmem:[%s2178_s5 + $0x28] sm:$0xff]  ;;  %v897_v52 = vld [vmem:[%s2178_s5 + $0x60] sm:$0xff] }
 0x136   :  { %1370 = vmatpush1.bf16.msra.mxu0 %v1369_v7  ;;  %1498 = vmatpush1.bf16.msra.mxu1 %v1497_v8  ;;  %v533_v7 = vld [vmem:[#allocation2 + $0x790] sm:$0xff]  ;;  %v1533_v9 = vpack.c.bf16 %v890_v62, %v889_v61  ;;  %v914_v40 = vld [vmem:[%s2178_s5 + $0xe8] sm:$0xff]  ;;  %v948_v62 = vld [vmem:[%s2178_s5 + $0x1f8] sm:$0xff] }
 0x137   :  { %1372 = vmatprep.subr.bf16.mxu0 %v1371_v11  ;;  %1500 = vmatprep.subr.bf16.mxu1 %v1499_v13  ;;  %v537_v8 = vld [vmem:[#allocation2 + $0x7b0] sm:$0xff]  ;;  %v542_v11 = vld [vmem:[#allocation2 + $0x7d8] sm:$0xff]  ;;  %v898_v51 = vld [vmem:[%s2178_s5 + $0x68] sm:$0xff] }
 0x138   :  { %v546_v13 = vld [vmem:[#allocation2 + $0x7f8] sm:$0xff]  ;;  %v1517_v15 = vpack.c.bf16 %v537_v8, %v533_v7  ;;  %v939_v7 = vld [vmem:[%s2178_s5 + $0x1b0] sm:$0xff] }
 0x139   :  { %v940_v8 = vld [vmem:[%s2178_s5 + $0x1b8] sm:$0xff] }
 0x13a   :  { %1374 = vmatpush1.bf16.msra.mxu0 %v1373_v20  ;;  %1502 = vmatpush1.bf16.msra.mxu1 %v1501_v21  ;;  %v1519_v20 = vpack.c.bf16 %v546_v13, %v542_v11  ;;  %v541_v21 = vld [vmem:[#allocation2 + $0x7d0] sm:$0xff]  ;;  %v892_v13 = vld [vmem:[%s2178_s5 + $0x38] sm:$0xff] }
 0x13b   :  { %1376 = vmatprep.subr.bf16.mxu0 %v1375_v24  ;;  %1504 = vmatprep.subr.bf16.mxu1 %v1503_v25  ;;  %v902_v24 = vld [vmem:[%s2178_s5 + $0x88] sm:$0xff]  ;;  %v933_v25 = vld [vmem:[%s2178_s5 + $0x180] sm:$0xff]  ;;  %v1521_v28 = vpack.c.bf16 %v545_v22, %v541_v21  ;;  %v891_v11 = vld [vmem:[%s2178_s5 + $0x30] sm:$0xff] }
 0x13c   :  { %v1523_v30 = vpack.c.bf16 %v902_v24, %v901_v23  ;;  %v1555_v32 = vpack.c.bf16 %v934_v45, %v933_v25  ;;  %v942_v21 = vld [vmem:[%s2178_s5 + $0x1c8] sm:$0xff]  ;;  %v1537_v22 = vpack.c.bf16 %v892_v13, %v891_v11  ;;  %v1569_v23 = vpack.c.bf16 %v924_v17, %v923_v16  ;;  %v893_v24 = vld [vmem:[%s2178_s5 + $0x40] sm:$0xff] }
 0x13d   :  { %v894_v25 = vld [vmem:[%s2178_s5 + $0x48] sm:$0xff] }
 0x13e   :  { %1378 = vmatpush1.bf16.msra.mxu0 %v1377_v33  ;;  %1506 = vmatpush1.bf16.msra.mxu1 %v1505_v34  ;;  %v885_v33 = vld [vmem:[%s2178_s5] sm:$0xff]  ;;  %v886_v34 = vld [vmem:[%s2178_s5 + $0x8] sm:$0xff] }
 0x13f   :  { %1380 = vmatprep.subr.bf16.mxu0 %v1379_v37  ;;  %1508 = vmatprep.subr.bf16.mxu1 %v1507_v38  ;;  %v936_v37 = vld [vmem:[%s2178_s5 + $0x198] sm:$0xff]  ;;  %v290_v38 = vmax.f32 %v281_v26, 0.0  ;;  %v1525_v41 = vpack.c.bf16 %v886_v34, %v885_v33  ;;  %v1541_v34 = vpack.c.bf16 %v894_v25, %v893_v24 }
 0x140   :  { %v944_v33 = vld [vmem:[%s2178_s5 + $0x1d8] sm:$0xff] }
 0x142   :  { %1382 = vmatpush1.bf16.msra.mxu0 %v1381_v49  ;;  %1510 = vmatpush1.bf16.msra.mxu1 %v1509_v50  ;;  %v1527_v49 = vpack.c.bf16 %v904_v35, %v903_v56  ;;  %v1559_v50 = vpack.c.bf16 %v936_v37, %v935_v36  ;;  %v896_v56 = vld [vmem:[%s2178_s5 + $0x58] sm:$0xff]  ;;  %v927_v37 = vld [vmem:[%s2178_s5 + $0x150] sm:$0xff] }
 0x143   :  { %1384 = vmatprep.subr.bf16.mxu0 %v1383_v54  ;;  %1512 = vmatprep.subr.bf16.mxu1 %v1511_v55  ;;  %v906_v54 = vld [vmem:[%s2178_s5 + $0xa8] sm:$0xff]  ;;  %v937_v55 = vld [vmem:[%s2178_s5 + $0x1a0] sm:$0xff]  ;;  %v1545_v47 = vpack.c.bf16 %v896_v56, %v895_v31 }
 0x146   :  { %1386 = vmatpush1.bf16.msra.mxu0 %v1385_v63  ;;  %1514 = vmatpush1.bf16.msra.mxu1 %v1513_v1  ;;  %v1531_v63 = vpack.c.bf16 %v906_v54, %v905_v53  ;;  %v1563_v1 = vpack.c.bf16 %v938_v57, %v937_v55  ;;  %v929_v53 = vld [vmem:[%s2178_s5 + $0x160] sm:$0xff]  ;;  %v1549_v54 = vpack.c.bf16 %v898_v51, %v897_v52  ;;  %v930_v55 = vld [vmem:[%s2178_s5 + $0x168] sm:$0xff] }
 0x147   :  { %1388 = vmatprep.subr.bf16.mxu0 %v1387_v5  ;;  %1516 = vmatprep.subr.bf16.mxu1 %v1515_v6  ;;  %v907_v5 = vld [vmem:[%s2178_s5 + $0xb0] sm:$0xff]  ;;  %v908_v6 = vld [vmem:[%s2178_s5 + $0xb8] sm:$0xff]  ;;  %v1581_v57 = vpack.c.bf16 %v930_v55, %v929_v53 }
 0x14a   :  { %1390 = vmatpush1.bf16.msra.mxu0 %v1389_v14  ;;  %1518 = vmatpush1.bf16.msra.mxu1 %v1517_v15  ;;  %v1535_v14 = vpack.c.bf16 %v908_v6, %v907_v5  ;;  %v1567_v15 = vpack.c.bf16 %v940_v8, %v939_v7  ;;  %v931_v5 = vld [vmem:[%s2178_s5 + $0x170] sm:$0xff]  ;;  %v932_v6 = vld [vmem:[%s2178_s5 + $0x178] sm:$0xff]  ;;  %v547_v8 = vld [vmem:[%s2177_s4] sm:$0xf] }
 0x14b   :  { %1392 = vmatprep.subr.bf16.mxu0 %v1391_v19  ;;  %1520 = vmatprep.subr.bf16.mxu1 %v1519_v20  ;;  %v910_v19 = vld [vmem:[%s2178_s5 + $0xc8] sm:$0xff]  ;;  %v941_v20 = vld [vmem:[%s2178_s5 + $0x1c0] sm:$0xff]  ;;  %v1585_v7 = vpack.c.bf16 %v932_v6, %v931_v5  ;;  %v556_v11 = vrot.slane %v547_v8, %v115_v46  ;;  %v564_v13 = vrot.slane %v547_v8, %v123_v12 }
 0x14c   :  { %v1539_v45 = vpack.c.bf16 %v910_v19, %v909_v18  ;;  %v1571_v26 = vpack.c.bf16 %v942_v21, %v941_v20 }
 0x14e   :  { %1394 = vmatpush1.bf16.msra.mxu0 %v1393_v27  ;;  %1522 = vmatpush1.bf16.msra.mxu1 %v1521_v28  ;;  %v925_v27 = vld [vmem:[%s2178_s5 + $0x140] sm:$0xff]  ;;  %v926_v28 = vld [vmem:[%s2178_s5 + $0x148] sm:$0xff] }
 0x14f   :  { %1524 = vmatprep.subr.bf16.mxu0 %v1523_v30  ;;  %1556 = vmatprep.subr.bf16.mxu1 %v1555_v32  ;;  %v912_v30 = vld [vmem:[%s2178_s5 + $0xd8] sm:$0xff]  ;;  %v943_v32 = vld [vmem:[%s2178_s5 + $0x1d0] sm:$0xff]  ;;  %v1573_v0 = vpack.c.bf16 %v926_v28, %v925_v27 }
 0x150   :  { %v1543_v35 = vpack.c.bf16 %v912_v30, %v911_v29  ;;  %v1575_v36 = vpack.c.bf16 %v944_v33, %v943_v32 }
 0x151   :  { %711 = vmatmul.mubr.f32.vlgmr.msra.gmra.mrb[4].mxu0 %v285_v39  ;;  %865 = vmatmul.mubr.f32.vlgmr.msra.gmra.mrb[4].mxu1 %v285_v39  ;;  %v913_v39 = vld [vmem:[%s2178_s5 + $0xe0] sm:$0xff] }
 0x152   :  { %716 = vmatprep.mubr.f32.mxu0 %v290_v38  ;;  %870 = vmatprep.mubr.f32.mxu1 %v290_v38  ;;  %v928_v38 = vld [vmem:[%s2178_s5 + $0x158] sm:$0xff] }
 0x153   :  { %1526 = vmatpush3.bf16.msra.mxu0 %v1525_v41  ;;  %1558 = vmatpush3.bf16.msra.mxu1 %v1557_v42  ;;  %v945_v41 = vld [vmem:[%s2178_s5 + $0x1e0] sm:$0xff]  ;;  %v946_v42 = vld [vmem:[%s2178_s5 + $0x1e8] sm:$0xff]  ;;  %v1577_v48 = vpack.c.bf16 %v928_v38, %v927_v37 }
 0x154   :  { %1528 = vmatprep.subr.bf16.mxu0 %v1527_v49  ;;  %1560 = vmatprep.subr.bf16.mxu1 %v1559_v50  ;;  %v1547_v49 = vpack.c.bf16 %v914_v40, %v913_v39  ;;  %v1579_v50 = vpack.c.bf16 %v946_v42, %v945_v41 }
 0x155   :  { %717 = vmatmul.mubr.f32.gmra.mrb[6].mxu0 %v289_v58  ;;  %871 = vmatmul.mubr.f32.gmra.mrb[6].mxu1 %v289_v58  ;;  %v915_v58 = vld [vmem:[%s2178_s5 + $0xf0] sm:$0xff] }
 0x157   :  { %1530 = vmatpush3.bf16.msra.mxu0 %v1529_v59  ;;  %1562 = vmatpush3.bf16.msra.mxu1 %v1561_v60  ;;  %v916_v59 = vld [vmem:[%s2178_s5 + $0xf8] sm:$0xff]  ;;  %v947_v60 = vld [vmem:[%s2178_s5 + $0x1f0] sm:$0xff] }
 0x158   :  { %1532 = vmatprep.subr.bf16.mxu0 %v1531_v63  ;;  %1564 = vmatprep.subr.bf16.mxu1 %v1563_v1  ;;  %v1551_v61 = vpack.c.bf16 %v916_v59, %v915_v58  ;;  %v899_v63 = vld [vmem:[%s2178_s5 + $0x70] sm:$0xff]  ;;  %v900_v1 = vld [vmem:[%s2178_s5 + $0x78] sm:$0xff]  ;;  %v1583_v2 = vpack.c.bf16 %v948_v62, %v947_v60 }
 0x159   :  { %v1553_v3 = vpack.c.bf16 %v900_v1, %v899_v63 }
 0x15b   :  { %1534 = vmatpush3.bf16.msra.mxu0 %v1533_v9  ;;  %1566 = vmatpush3.bf16.msra.mxu1 %v1565_v10  ;;  %v552_v9 = vrot.slane %v547_v8, %v111_v44  ;;  %v560_v10 = vrot.slane %v547_v8, %v119_v4 }
 0x15c   :  { %1536 = vmatprep.subr.bf16.mxu0 %v1535_v14  ;;  %1568 = vmatprep.subr.bf16.mxu1 %v1567_v15 }
 0x15f   :  { %1538 = vmatpush3.bf16.msra.mxu0 %v1537_v22  ;;  %1570 = vmatpush3.bf16.msra.mxu1 %v1569_v23 }
 0x160   :  { %1540 = vmatprep.subr.bf16.mxu0 %v1539_v45  ;;  %1572 = vmatprep.subr.bf16.mxu1 %v1571_v26 }
 0x163   :  { %1542 = vmatpush3.bf16.msra.mxu0 %v1541_v34  ;;  %1574 = vmatpush3.bf16.msra.mxu1 %v1573_v0  ;;  %v1126_v0 = vld [vmem:[%s2179_s6] ss:$0 sm:$0xff]  ;;  %s1632_s6 = scalar_lea.vmem %s1115_s24, 256 }
 0x164   :  { %1544 = vmatprep.subr.bf16.mxu0 %v1543_v35  ;;  %1576 = vmatprep.subr.bf16.mxu1 %v1575_v36  ;;  %p1633_p8 = scmp.ne.s32.totalorder %s1115_s24, %s1632_s6  ;;  %p1638_p10 = scmp.lt.s32.totalorder %s1632_s6, %s1632_s6 }
 0x166   :  { %p1639_p11 = por %p1638_p10, %p1637_p9 }
 0x167   :  { %1546 = vmatpush3.bf16.msra.mxu0 %v1545_v47  ;;  %1578 = vmatpush3.bf16.msra.mxu1 %v1577_v48 }
 0x168   :  { %1548 = vmatprep.subr.bf16.mxu0 %v1547_v49  ;;  %1580 = vmatprep.subr.bf16.mxu1 %v1579_v50  ;;  %p1640_p12 = pnand %p1639_p11, %p1633_p8 }
 0x16b   :  { %1550 = vmatpush3.bf16.msra.mxu0 %v1549_v54  ;;  %1582 = vmatpush3.bf16.msra.mxu1 %v1581_v57 }
 0x16c   :  { %1552 = vmatprep.subr.bf16.mxu0 %v1551_v61  ;;  %1584 = vmatprep.subr.bf16.mxu1 %v1583_v2 }
 0x16f   :  { %1554 = vmatpush3.bf16.msra.mxu0 %v1553_v3  ;;  %1586 = vmatpush3.bf16.msra.mxu1 %v1585_v7 }
 0x224   :  { %v712_v14 = vpop.f32.mrb[4].mxu0  ;;  %v866_v15 = vpop.f32.mrb[4].mxu1 }
 0x225   :  { %v1587_v16 = vadd.f32 %v712_v14, %v552_v9  ;;  %v1591_v17 = vadd.f32 %v866_v15, %v560_v10  ;;  %v714_v18 = vpop.f32.mrb[5].mxu0  ;;  %v868_v19 = vpop.f32.mrb[5].mxu1 }
 0x226   :  { %v1588_v20 = vadd.f32 %v714_v18, %v556_v11  ;;  %v1592_v21 = vadd.f32 %v868_v19, %v564_v13 }
 0x227   :  { %v877_v25 = vmax.f32 %v1587_v16, 0.0  ;;  %v879_v4 = vmax.f32 %v1591_v17, 0.0 }
 0x228   :  { %v878_v22 = vmax.f32 %v1588_v20, 0.0  ;;  %v880_v23 = vmax.f32 %v1592_v21, 0.0  ;;  %v718_v44 = vpop.f32.mrb[6].mxu0  ;;  %v872_v24 = vpop.f32.mrb[6].mxu1 }
 0x229   :  { %v1589_v45 = vadd.f32 %v718_v44, %v552_v9  ;;  %v1593_v26 = vadd.f32 %v872_v24, %v560_v10  ;;  %v720_v46 = vpop.f32.mrb[7].mxu0  ;;  %v874_v27 = vpop.f32.mrb[7].mxu1 }
 0x22a   :  { %v1590_v43 = vadd.f32 %v720_v46, %v556_v11  ;;  %v1594_v12 = vadd.f32 %v874_v27, %v564_v13  ;;  %1020 = vmatprep.mubr.f32.mxu0 %v878_v22  ;;  %1095 = vmatprep.mubr.f32.mxu1 %v880_v23 }
 0x22b   :  { %1021 = vmatmul.mubr.f32.vlgmr.msra.gmra.mrb[8].mxu0 %v877_v25  ;;  %1096 = vmatmul.mubr.f32.vlgmr.msra.gmra.mrb[8].mxu1 %v879_v4  ;;  %v881_v30 = vmax.f32 %v1589_v45, 0.0  ;;  %v883_v32 = vmax.f32 %v1593_v26, 0.0 }
 0x22c   :  { %v882_v28 = vmax.f32 %v1590_v43, 0.0  ;;  %v884_v29 = vmax.f32 %v1594_v12, 0.0 }
 0x22e   :  { %1025 = vmatprep.mubr.f32.mxu0 %v882_v28  ;;  %1100 = vmatprep.mubr.f32.mxu1 %v884_v29 }
 0x22f   :  { %1026 = vmatmul.mubr.f32.gmra.mrb[10].mxu0 %v881_v30  ;;  %1101 = vmatmul.mubr.f32.gmra.mrb[10].mxu1 %v883_v32 }
 0x2fe   :  { %v1159_v33 = vpop.f32.mrb[8].mxu0  ;;  %v1197_v34 = vpop.f32.mrb[8].mxu1 }
 0x2ff   :  { %v1160_v31 = vpop.f32.mrb[9].mxu0  ;;  %v1198_v56 = vpop.f32.mrb[9].mxu1 }
 0x300   :  { %v1161_v35 = vadd.f32 %v1160_v31, %v1159_v33  ;;  %v1199_v36 = vadd.f32 %v1198_v56, %v1197_v34 }
 0x302   :  { %v1023_v37 = vadd.f32 %v1161_v35, %v1126_v0  ;;  %v1162_v38 = vpop.f32.mrb[10].mxu0  ;;  %v1200_v39 = vpop.f32.mrb[10].mxu1 }
 0x303   :  { %v1163_v40 = vpop.f32.mrb[11].mxu0  ;;  %v1201_v41 = vpop.f32.mrb[11].mxu1 }
 0x304   :  { %v1098_v42 = vadd.f32 %v1199_v36, %v1023_v37  ;;  %v1164_v47 = vadd.f32 %v1163_v40, %v1162_v38  ;;  %v1202_v48 = vadd.f32 %v1201_v41, %v1200_v39 }
 0x306   :  { %1107 = vst.msk [vmem:[#allocation5] sm:$0xff] %vm1106_vm0, %v1098_v42  ;;  %v1028_v49 = vadd.f32 %v1164_v47, %v1126_v0 }
 0x308   :  { %v1103_v50 = vadd.f32 %v1202_v48, %v1028_v49 }
 0x30a   :  { %1108 = vst.msk [vmem:[#allocation5 + $0x8] sm:$0xff] %vm1106_vm0, %v1103_v50 }
 0x30b   :  { %1643 = shalt.err (!%p1640_p12)
}
 0x30c   :  { %s1644_s1 = scalar_lea.hbm %s2180_s7, 256 }
 0x30d   :  { %p1645_p13 = scmp.ne.s32.totalorder %s2180_s7, %s1644_s1  ;;  %p1648_p0 = scmp.lt.u32.totalorder %s1644_s1, %s2180_s7 }
 0x30f   :  { %p1650_p1 = pnand %p1648_p0, %p1645_p13 }
 0x311   :  { %1653 = shalt.err (!%p1650_p1)
}
 0x312   :  { %s1663_s29 = smov 128   ;;  %s1664_s30 = smov 8  }
 0x313   :  { %1120 = dma.vmem_to_hbm [thread:$0]  %s1115_s24, 256, %s2180_s7, [#allocation4], %s1663_s29, %s1663_s29, %s1664_s30  }
 0x314   :  { %1656 = dma.done.wait [#allocation4], 256  }
 0x315   :  { %1657 = vsyncadd [#allocation4], 4294967040 }
 0x316   :  { %1124 = vsyncpa [#allocation3], 1 }
 0x317   :  { %1125 = vsyncpa [#allocation4], 1 }

</bundles_post_ra>
